<compile_context>
chip_gen: v5e
topology: v5e:2x2
jax: 0.10.0
libtpu: 0.0.40
codegen_flags: <defaults>
</compile_context>

<pallas_src>
import math

import jax
import jax.numpy as jnp
from jax import lax
from jax.experimental import pallas as pl
from jax.experimental.pallas import tpu as pltpu

# ---------------- small BERT config (synthetic, not a checkpoint) -----------
BATCH = 2
SEQ = 8
HIDDEN = 32
HEADS = 4
HEAD_DIM = HIDDEN // HEADS
INTER = 64
LAYERS = 2
VOCAB = 50
MAX_POS = 16
LN_EPS = 1e-12
ATTN_SCALE = 1.0 / math.sqrt(HEAD_DIM)

# rows inside the packed per-layer vector slab (LAYERS, VEC_ROWS, 128)
ROW_BO, ROW_LN1G, ROW_LN1B, ROW_B1, ROW_B2, ROW_LN2G, ROW_LN2B = range(7)
VEC_ROWS = 8          # pad row count to the sublane multiple
# rows inside the global vector slab (8, 128)
GROW_EMB_G, GROW_EMB_B, GROW_BP = range(3)


# ---------------- in-kernel math helpers -------------------------------------
def _layernorm(x, g, b):
    mu = jnp.mean(x, axis=-1, keepdims=True)
    xc = x - mu
    var = jnp.mean(xc * xc, axis=-1, keepdims=True)
    return xc * lax.rsqrt(var + LN_EPS) * g + b


def _gelu(x):
    # exact (erf) GELU, matching BERT.
    return 0.5 * x * (1.0 + lax.erf(x * (1.0 / math.sqrt(2.0))))


# ---------------- the single fused kernel ------------------------------------
def _bert_kernel(x_ref, gvec_ref, lvec_ref, qkvb_ref, wqkv_ref, wo_ref,
                 w1_ref, w2_ref, wp_ref, pooled_ref):
    # One grid step == one sequence of the batch ("parallel" axis -> on v7x
    # the two sequences run on the two TensorCores).
    x = x_ref[0]                                                # (SEQ, HIDDEN) f32
    x = _layernorm(x,
                   gvec_ref[GROW_EMB_G:GROW_EMB_G + 1, :HIDDEN],
                   gvec_ref[GROW_EMB_B:GROW_EMB_B + 1, :HIDDEN])

    # Static unroll over layers (LAYERS == 2, all weights already in VMEM):
    # no layer grid axis -> no per-layer dispatch / DMA-descriptor overhead.
    for l in range(LAYERS):
        # ---- self-attention: head-major batched dot_generals, no lane
        # ---- slicing / concatenates.  1/sqrt(d) is folded into wq/bq.
        xb = jnp.broadcast_to(x.astype(jnp.bfloat16), (HEADS, SEQ, HIDDEN))
        q = jnp.einsum("nsh,nhd->nsd", xb, wqkv_ref[l, 0],
                       preferred_element_type=jnp.float32) + qkvb_ref[l, 0]
        k = jnp.einsum("nsh,nhd->nsd", xb, wqkv_ref[l, 1],
                       preferred_element_type=jnp.float32) + qkvb_ref[l, 1]
        v = jnp.einsum("nsh,nhd->nsd", xb, wqkv_ref[l, 2],
                       preferred_element_type=jnp.float32) + qkvb_ref[l, 2]

        s = jnp.einsum("nqd,nkd->nqk", q, k,
                       preferred_element_type=jnp.float32)      # (HEADS,SEQ,SEQ)
        s = s - jnp.max(s, axis=-1, keepdims=True)
        p = jnp.exp(s)
        p = p * pl.reciprocal(jnp.sum(p, axis=-1, keepdims=True), approx=True)
        ctx = jnp.einsum("nqk,nkd->nqd", p, v,
                         preferred_element_type=jnp.float32)    # (HEADS,SEQ,HEAD_DIM)

        # Output projection with head-major Wo; merging heads == sum over n.
        proj = jnp.einsum("nqd,ndh->nqh", ctx.astype(jnp.bfloat16), wo_ref[l],
                          preferred_element_type=jnp.float32)   # (HEADS,SEQ,HIDDEN)
        attn = jnp.sum(proj, axis=0) + lvec_ref[l, ROW_BO:ROW_BO + 1, :HIDDEN]
        x = _layernorm(attn + x,
                       lvec_ref[l, ROW_LN1G:ROW_LN1G + 1, :HIDDEN],
                       lvec_ref[l, ROW_LN1B:ROW_LN1B + 1, :HIDDEN])

        # ---- feed-forward ----
        h = jnp.dot(x.astype(jnp.bfloat16), w1_ref[l],
                    preferred_element_type=jnp.float32)
        h = _gelu(h + lvec_ref[l, ROW_B1:ROW_B1 + 1, :INTER])
        f = jnp.dot(h.astype(jnp.bfloat16), w2_ref[l],
                    preferred_element_type=jnp.float32)
        f = f + lvec_ref[l, ROW_B2:ROW_B2 + 1, :HIDDEN]
        x = _layernorm(f + x,
                       lvec_ref[l, ROW_LN2G:ROW_LN2G + 1, :HIDDEN],
                       lvec_ref[l, ROW_LN2B:ROW_LN2B + 1, :HIDDEN])

    # ---- pooler: tanh(CLS @ Wp + bp); CLS is row 0 of this sequence ----
    cls = x[0:1, :]                                             # (1, HIDDEN)
    pooled = jnp.tanh(jnp.dot(cls, wp_ref[...],
                              preferred_element_type=jnp.float32)
                      + gvec_ref[GROW_BP:GROW_BP + 1, :HIDDEN])
    pooled_ref[...] = pooled.reshape(1, 1, HIDDEN).astype(pooled_ref.dtype)


# ---------------- BlockSpec helper --------------------------------------------
def _const_spec(shape):
    n = len(shape)
    return pl.BlockSpec(tuple(shape), lambda b, _n=n: (0,) * _n)


# ---------------- full forward (== Bert.forward -> pooled_output) -------------
@jax.jit
def bert_forward(kp, input_ids):
    B, S = input_ids.shape
    # Embeddings: word + position + token_type(0) (plain-JAX gather glue).
    x_emb = (kp["word_emb"][input_ids]
             + kp["pos_emb"][jnp.arange(S)][None, :, :]
             + kp["type_emb"][0][None, None, :])                # (B, S, HIDDEN) f32

    operands = (x_emb, kp["gvec"], kp["lvec"], kp["qkv_b"], kp["wqkv"],
                kp["wo"], kp["w1"], kp["w2"], kp["wp"])
    in_specs = [pl.BlockSpec((1, SEQ, HIDDEN), lambda b: (b, 0, 0))]
    in_specs += [_const_spec(op.shape) for op in operands[1:]]

    pooled = pl.pallas_call(
        _bert_kernel,
        out_shape=jax.ShapeDtypeStruct((B, 1, HIDDEN), jnp.float32),
        grid=(B,),
        in_specs=in_specs,
        out_specs=pl.BlockSpec((1, 1, HIDDEN), lambda b: (b, 0, 0)),
        compiler_params=pltpu.CompilerParams(
            dimension_semantics=("parallel",)),     # batch axis -> 2nd TC on v7x
    )(*operands)
    return pooled.reshape(B, HIDDEN)


# ---------------- deterministic parameter init + host-side packing ------------
def init_params(key):
    k_emb, k_wp, k_layers, k_misc = jax.random.split(key, 4)

    def dense(k, fi, fo):
        kw, kb = jax.random.split(k)
        w = jax.random.normal(kw, (fi, fo), jnp.float32) * 0.02
        b = jax.random.normal(kb, (fo,), jnp.float32) * 0.01
        return w, b

    ke = jax.random.split(k_emb, 3)
    word_emb = jax.random.normal(ke[0], (VOCAB, HIDDEN), jnp.float32) * 0.02
    pos_emb = jax.random.normal(ke[1], (MAX_POS, HIDDEN), jnp.float32) * 0.02
    type_emb = jax.random.normal(ke[2], (2, HIDDEN), jnp.float32) * 0.02

    km = jax.random.split(k_misc, 2)
    emb_ln_g = 1.0 + 0.1 * jax.random.normal(km[0], (HIDDEN,), jnp.float32)
    emb_ln_b = 0.02 * jax.random.normal(km[1], (HIDDEN,), jnp.float32)

    wp, bp = dense(k_wp, HIDDEN, HIDDEN)

    raw = []
    lkeys = jax.random.split(k_layers, LAYERS)
    for li in range(LAYERS):
        lk = jax.random.split(lkeys[li], 10)
        wq, bq = dense(lk[0], HIDDEN, HIDDEN)
        wk, bk = dense(lk[1], HIDDEN, HIDDEN)
        wv, bv = dense(lk[2], HIDDEN, HIDDEN)
        wo, bo = dense(lk[3], HIDDEN, HIDDEN)
        w1, b1 = dense(lk[4], HIDDEN, INTER)
        w2, b2 = dense(lk[5], INTER, HIDDEN)
        ln1_g = 1.0 + 0.1 * jax.random.normal(lk[6], (HIDDEN,), jnp.float32)
        ln1_b = 0.02 * jax.random.normal(lk[7], (HIDDEN,), jnp.float32)
        ln2_g = 1.0 + 0.1 * jax.random.normal(lk[8], (HIDDEN,), jnp.float32)
        ln2_b = 0.02 * jax.random.normal(lk[9], (HIDDEN,), jnp.float32)
        raw.append(dict(wq=wq, bq=bq, wk=wk, bk=bk, wv=wv, bv=bv, wo=wo, bo=bo,
                        w1=w1, b1=b1, w2=w2, b2=b2,
                        ln1_g=ln1_g, ln1_b=ln1_b, ln2_g=ln2_g, ln2_b=ln2_b))

    # --- one-time host-side packing for the kernel (head-major, scale folded) ---
    def in_heads(w):   # (HIDDEN, HIDDEN) -> (HEADS, HIDDEN, HEAD_DIM)
        return w.reshape(HIDDEN, HEADS, HEAD_DIM).transpose(1, 0, 2)

    wqkv, qkv_b, wo_h, w1s, w2s, lvec = [], [], [], [], [], []
    for r in raw:
        wqkv.append(jnp.stack([in_heads(r["wq"]) * ATTN_SCALE,
                               in_heads(r["wk"]),
                               in_heads(r["wv"])]))
        qkv_b.append(jnp.stack([
            (r["bq"] * ATTN_SCALE).reshape(HEADS, 1, HEAD_DIM),
            r["bk"].reshape(HEADS, 1, HEAD_DIM),
            r["bv"].reshape(HEADS, 1, HEAD_DIM)]))
        wo_h.append(r["wo"].reshape(HEADS, HEAD_DIM, HIDDEN))
        w1s.append(r["w1"])
        w2s.append(r["w2"])
        rows = jnp.zeros((VEC_ROWS, 128), jnp.float32)
        rows = rows.at[ROW_BO, :HIDDEN].set(r["bo"])
        rows = rows.at[ROW_LN1G, :HIDDEN].set(r["ln1_g"])
        rows = rows.at[ROW_LN1B, :HIDDEN].set(r["ln1_b"])
        rows = rows.at[ROW_B1, :INTER].set(r["b1"])
        rows = rows.at[ROW_B2, :HIDDEN].set(r["b2"])
        rows = rows.at[ROW_LN2G, :HIDDEN].set(r["ln2_g"])
        rows = rows.at[ROW_LN2B, :HIDDEN].set(r["ln2_b"])
        lvec.append(rows)

    gvec = jnp.zeros((8, 128), jnp.float32)
    gvec = gvec.at[GROW_EMB_G, :HIDDEN].set(emb_ln_g)
    gvec = gvec.at[GROW_EMB_B, :HIDDEN].set(emb_ln_b)
    gvec = gvec.at[GROW_BP, :HIDDEN].set(bp)

    kernel = {
        "word_emb": word_emb, "pos_emb": pos_emb, "type_emb": type_emb,
        "gvec": gvec,                                    # (8, 128) f32
        "lvec": jnp.stack(lvec),                         # (L, 8, 128) f32
        "qkv_b": jnp.stack(qkv_b),                       # (L, 3, HEADS, 1, D) f32
        "wqkv": jnp.stack(wqkv).astype(jnp.bfloat16),    # (L, 3, HEADS, H, D)
        "wo": jnp.stack(wo_h).astype(jnp.bfloat16),      # (L, HEADS, D, H)
        "w1": jnp.stack(w1s).astype(jnp.bfloat16),       # (L, H, INTER)
        "w2": jnp.stack(w2s).astype(jnp.bfloat16),       # (L, INTER, H)
        "wp": wp,                                        # (H, H) f32 (pooler)
    }
    ref = {
        "word_emb": word_emb, "pos_emb": pos_emb, "type_emb": type_emb,
        "emb_ln_g": emb_ln_g, "emb_ln_b": emb_ln_b,
        "wp": wp, "bp": bp, "layers": raw,
    }
    return kernel, ref


# ---------------- pure-JAX reference (loose sanity check) ---------------------
def bert_reference(rp, input_ids):
    B, S = input_ids.shape
    x = (rp["word_emb"][input_ids]
         + rp["pos_emb"][jnp.arange(S)][None, :, :]
         + rp["type_emb"][0][None, None, :]).reshape(B * S, HIDDEN)

    def ln(t, g, b):
        mu = t.mean(-1, keepdims=True)
        var = ((t - mu) ** 2).mean(-1, keepdims=True)
        return (t - mu) / jnp.sqrt(var + LN_EPS) * g + b

    def heads(t):
        return t.reshape(B, S, HEADS, HEAD_DIM).transpose(0, 2, 1, 3)

    x = ln(x, rp["emb_ln_g"], rp["emb_ln_b"])
    for r in rp["layers"]:
        q = x @ r["wq"] + r["bq"]
        k = x @ r["wk"] + r["bk"]
        v = x @ r["wv"] + r["bv"]
        s = jnp.einsum("bhqd,bhkd->bhqk", heads(q), heads(k)) * ATTN_SCALE
        p = jax.nn.softmax(s, axis=-1)
        ctx = jnp.einsum("bhqk,bhkd->bhqd", p, heads(v))
        ctx = ctx.transpose(0, 2, 1, 3).reshape(B * S, HIDDEN)
        x = ln(ctx @ r["wo"] + r["bo"] + x, r["ln1_g"], r["ln1_b"])
        h = x @ r["w1"] + r["b1"]
        h = 0.5 * h * (1.0 + lax.erf(h / math.sqrt(2.0)))
        x = ln(h @ r["w2"] + r["b2"] + x, r["ln2_g"], r["ln2_b"])
    cls = x.reshape(B, S, HIDDEN)[:, 0, :]
    return jnp.tanh(cls @ rp["wp"] + rp["bp"])


if __name__ == "__main__":
    key = jax.random.PRNGKey(0)
    pkey, dkey = jax.random.split(key)
    kparams, rparams = init_params(pkey)
    input_ids = jax.random.randint(dkey, (BATCH, SEQ), 0, VOCAB, dtype=jnp.int32)

    pooled = jax.block_until_ready(bert_forward(kparams, input_ids))

    assert pooled.shape == (BATCH, HIDDEN)
    assert bool(jnp.all(jnp.isfinite(pooled)))
    # Loose check vs f32 reference (bf16 matmul inputs + approx softmax recip).
    ref = bert_reference(rparams, input_ids)
    assert bool(jnp.allclose(pooled, ref, atol=3e-2, rtol=3e-2))
    print("KERNEL_OK")
</pallas_src>

<mosaic_0001>
module attributes {stable_mosaic.version = 11 : i64} {
  func.func @_bert_kernel(%arg0: i32, %arg1: memref<1x8x32xf32, #tpu.memory_space<vmem>>, %arg2: memref<8x128xf32, #tpu.memory_space<vmem>>, %arg3: memref<2x8x128xf32, #tpu.memory_space<vmem>>, %arg4: memref<2x3x4x1x8xf32, #tpu.memory_space<vmem>>, %arg5: memref<2x3x4x32x8xbf16, #tpu.memory_space<vmem>>, %arg6: memref<2x4x8x32xbf16, #tpu.memory_space<vmem>>, %arg7: memref<2x32x64xbf16, #tpu.memory_space<vmem>>, %arg8: memref<2x64x32xbf16, #tpu.memory_space<vmem>>, %arg9: memref<32x32xf32, #tpu.memory_space<vmem>>, %arg10: memref<1x1x32xf32, #tpu.memory_space<vmem>>) attributes {dimension_semantics = [#tpu.dimension_semantics<parallel>], iteration_bounds = array<i64: 2>, scalar_prefetch = 0 : i64, scratch_operands = 0 : i64, tpu.core_type = #tpu.core_type<tc>, window_params = [{transform_indices = @transform_0, window_bounds = array<i64: 1, 8, 32>}, {pipeline_mode = #tpu.pipeline_mode<synchronous>, transform_indices = @transform_1, window_bounds = array<i64: 8, 128>}, {pipeline_mode = #tpu.pipeline_mode<synchronous>, transform_indices = @transform_2, window_bounds = array<i64: 2, 8, 128>}, {pipeline_mode = #tpu.pipeline_mode<synchronous>, transform_indices = @transform_3, window_bounds = array<i64: 2, 3, 4, 1, 8>}, {pipeline_mode = #tpu.pipeline_mode<synchronous>, transform_indices = @transform_4, window_bounds = array<i64: 2, 3, 4, 32, 8>}, {pipeline_mode = #tpu.pipeline_mode<synchronous>, transform_indices = @transform_5, window_bounds = array<i64: 2, 4, 8, 32>}, {pipeline_mode = #tpu.pipeline_mode<synchronous>, transform_indices = @transform_6, window_bounds = array<i64: 2, 32, 64>}, {pipeline_mode = #tpu.pipeline_mode<synchronous>, transform_indices = @transform_7, window_bounds = array<i64: 2, 64, 32>}, {pipeline_mode = #tpu.pipeline_mode<synchronous>, transform_indices = @transform_8, window_bounds = array<i64: 32, 32>}, {transform_indices = @transform_9, window_bounds = array<i64: 1, 1, 32>}]} {
    %c0 = arith.constant 0 : index
    %c0_0 = arith.constant 0 : index
    %c0_1 = arith.constant 0 : index
    %0 = vector.load %arg1[%c0, %c0_0, %c0_1] : memref<1x8x32xf32, #tpu.memory_space<vmem>>, vector<1x8x32xf32>
    %1 = vector.shape_cast %0 : vector<1x8x32xf32> to vector<8x32xf32>
    %c0_2 = arith.constant 0 : index
    %c0_3 = arith.constant 0 : index
    %2 = vector.load %arg2[%c0_2, %c0_3] : memref<8x128xf32, #tpu.memory_space<vmem>>, vector<1x32xf32>
    %c1 = arith.constant 1 : index
    %c0_4 = arith.constant 0 : index
    %3 = vector.load %arg2[%c1, %c0_4] : memref<8x128xf32, #tpu.memory_space<vmem>>, vector<1x32xf32>
    %cst = arith.constant dense<0.000000e+00> : vector<8xf32>
    %4 = vector.multi_reduction <add>, %1, %cst [1] : vector<8x32xf32> to vector<8xf32>
    %5 = vector.shape_cast %4 : vector<8xf32> to vector<8x1xf32>
    %cst_5 = arith.constant 3.200000e+01 : f32
    %6 = vector.broadcast %cst_5 : f32 to vector<8x1xf32>
    %7 = arith.divf %5, %6 : vector<8x1xf32>
    %8 = vector.broadcast %7 : vector<8x1xf32> to vector<8x32xf32>
    %9 = arith.subf %1, %8 : vector<8x32xf32>
    %10 = arith.mulf %9, %9 : vector<8x32xf32>
    %cst_6 = arith.constant dense<0.000000e+00> : vector<8xf32>
    %11 = vector.multi_reduction <add>, %10, %cst_6 [1] : vector<8x32xf32> to vector<8xf32>
    %12 = vector.shape_cast %11 : vector<8xf32> to vector<8x1xf32>
    %cst_7 = arith.constant 3.200000e+01 : f32
    %13 = vector.broadcast %cst_7 : f32 to vector<8x1xf32>
    %14 = arith.divf %12, %13 : vector<8x1xf32>
    %cst_8 = arith.constant 9.99999996E-13 : f32
    %15 = vector.broadcast %cst_8 : f32 to vector<8x1xf32>
    %16 = arith.addf %14, %15 : vector<8x1xf32>
    %17 = math.rsqrt %16 : vector<8x1xf32>
    %18 = vector.broadcast %17 : vector<8x1xf32> to vector<8x32xf32>
    %19 = arith.mulf %9, %18 : vector<8x32xf32>
    %20 = vector.broadcast %2 : vector<1x32xf32> to vector<8x32xf32>
    %21 = arith.mulf %19, %20 : vector<8x32xf32>
    %22 = vector.broadcast %3 : vector<1x32xf32> to vector<8x32xf32>
    %23 = arith.addf %21, %22 : vector<8x32xf32>
    %24 = arith.truncf %23 : vector<8x32xf32> to vector<8x32xbf16>
    %25 = vector.shape_cast %24 : vector<8x32xbf16> to vector<1x8x32xbf16>
    %26 = vector.broadcast %25 : vector<1x8x32xbf16> to vector<4x8x32xbf16>
    %c0_9 = arith.constant 0 : index
    %c0_10 = arith.constant 0 : index
    %c0_11 = arith.constant 0 : index
    %c0_12 = arith.constant 0 : index
    %c0_13 = arith.constant 0 : index
    %27 = vector.load %arg5[%c0_9, %c0_10, %c0_11, %c0_12, %c0_13] : memref<2x3x4x32x8xbf16, #tpu.memory_space<vmem>>, vector<1x1x4x32x8xbf16>
    %28 = vector.shape_cast %27 : vector<1x1x4x32x8xbf16> to vector<4x32x8xbf16>
    "tpu.trace_start"() <{level = 10 : i32, message = "nsh,nhd->nsd"}> : () -> ()
    %cst_14 = arith.constant dense<0.000000e+00> : vector<4x8x8xf32>
    %29 = tpu.matmul %26, %28, %cst_14 {dimension_numbers = #tpu.dot_dimension_numbers<[2], [1], [1], [2], [0, 0, 0, 1, 1, 2], [0], [0]>} : vector<4x8x32xbf16>, vector<4x32x8xbf16>, vector<4x8x8xf32> -> vector<4x8x8xf32>
    "tpu.trace_stop"() : () -> ()
    %c0_15 = arith.constant 0 : index
    %c0_16 = arith.constant 0 : index
    %c0_17 = arith.constant 0 : index
    %c0_18 = arith.constant 0 : index
    %c0_19 = arith.constant 0 : index
    %30 = vector.load %arg4[%c0_15, %c0_16, %c0_17, %c0_18, %c0_19] : memref<2x3x4x1x8xf32, #tpu.memory_space<vmem>>, vector<1x1x4x1x8xf32>
    %31 = vector.shape_cast %30 : vector<1x1x4x1x8xf32> to vector<4x1x8xf32>
    %32 = vector.broadcast %31 : vector<4x1x8xf32> to vector<4x8x8xf32>
    %33 = arith.addf %29, %32 : vector<4x8x8xf32>
    %c0_20 = arith.constant 0 : index
    %c1_21 = arith.constant 1 : index
    %c0_22 = arith.constant 0 : index
    %c0_23 = arith.constant 0 : index
    %c0_24 = arith.constant 0 : index
    %34 = vector.load %arg5[%c0_20, %c1_21, %c0_22, %c0_23, %c0_24] : memref<2x3x4x32x8xbf16, #tpu.memory_space<vmem>>, vector<1x1x4x32x8xbf16>
    %35 = vector.shape_cast %34 : vector<1x1x4x32x8xbf16> to vector<4x32x8xbf16>
    "tpu.trace_start"() <{level = 10 : i32, message = "nsh,nhd->nsd"}> : () -> ()
    %cst_25 = arith.constant dense<0.000000e+00> : vector<4x8x8xf32>
    %36 = tpu.matmul %26, %35, %cst_25 {dimension_numbers = #tpu.dot_dimension_numbers<[2], [1], [1], [2], [0, 0, 0, 1, 1, 2], [0], [0]>} : vector<4x8x32xbf16>, vector<4x32x8xbf16>, vector<4x8x8xf32> -> vector<4x8x8xf32>
    "tpu.trace_stop"() : () -> ()
    %c0_26 = arith.constant 0 : index
    %c1_27 = arith.constant 1 : index
    %c0_28 = arith.constant 0 : index
    %c0_29 = arith.constant 0 : index
    %c0_30 = arith.constant 0 : index
    %37 = vector.load %arg4[%c0_26, %c1_27, %c0_28, %c0_29, %c0_30] : memref<2x3x4x1x8xf32, #tpu.memory_space<vmem>>, vector<1x1x4x1x8xf32>
    %38 = vector.shape_cast %37 : vector<1x1x4x1x8xf32> to vector<4x1x8xf32>
    %39 = vector.broadcast %38 : vector<4x1x8xf32> to vector<4x8x8xf32>
    %40 = arith.addf %36, %39 : vector<4x8x8xf32>
    %c0_31 = arith.constant 0 : index
    %c2 = arith.constant 2 : index
    %c0_32 = arith.constant 0 : index
    %c0_33 = arith.constant 0 : index
    %c0_34 = arith.constant 0 : index
    %41 = vector.load %arg5[%c0_31, %c2, %c0_32, %c0_33, %c0_34] : memref<2x3x4x32x8xbf16, #tpu.memory_space<vmem>>, vector<1x1x4x32x8xbf16>
    %42 = vector.shape_cast %41 : vector<1x1x4x32x8xbf16> to vector<4x32x8xbf16>
    "tpu.trace_start"() <{level = 10 : i32, message = "nsh,nhd->nsd"}> : () -> ()
    %cst_35 = arith.constant dense<0.000000e+00> : vector<4x8x8xf32>
    %43 = tpu.matmul %26, %42, %cst_35 {dimension_numbers = #tpu.dot_dimension_numbers<[2], [1], [1], [2], [0, 0, 0, 1, 1, 2], [0], [0]>} : vector<4x8x32xbf16>, vector<4x32x8xbf16>, vector<4x8x8xf32> -> vector<4x8x8xf32>
    "tpu.trace_stop"() : () -> ()
    %c0_36 = arith.constant 0 : index
    %c2_37 = arith.constant 2 : index
    %c0_38 = arith.constant 0 : index
    %c0_39 = arith.constant 0 : index
    %c0_40 = arith.constant 0 : index
    %44 = vector.load %arg4[%c0_36, %c2_37, %c0_38, %c0_39, %c0_40] : memref<2x3x4x1x8xf32, #tpu.memory_space<vmem>>, vector<1x1x4x1x8xf32>
    %45 = vector.shape_cast %44 : vector<1x1x4x1x8xf32> to vector<4x1x8xf32>
    %46 = vector.broadcast %45 : vector<4x1x8xf32> to vector<4x8x8xf32>
    %47 = arith.addf %43, %46 : vector<4x8x8xf32>
    "tpu.trace_start"() <{level = 10 : i32, message = "nqd,nkd->nqk"}> : () -> ()
    %cst_41 = arith.constant dense<0.000000e+00> : vector<4x8x8xf32>
    %48 = tpu.matmul %33, %40, %cst_41 {dimension_numbers = #tpu.dot_dimension_numbers<[2], [2], [1], [1], [0, 0, 0, 1, 1, 1], [0], [0]>} : vector<4x8x8xf32>, vector<4x8x8xf32>, vector<4x8x8xf32> -> vector<4x8x8xf32>
    "tpu.trace_stop"() : () -> ()
    %cst_42 = arith.constant dense<0xFF800000> : vector<4x8xf32>
    %49 = vector.multi_reduction <maximumf>, %48, %cst_42 [2] : vector<4x8x8xf32> to vector<4x8xf32>
    %50 = vector.shape_cast %49 : vector<4x8xf32> to vector<4x8x1xf32>
    %51 = vector.broadcast %50 : vector<4x8x1xf32> to vector<4x8x8xf32>
    %52 = arith.subf %48, %51 : vector<4x8x8xf32>
    %53 = math.exp %52 : vector<4x8x8xf32>
    %cst_43 = arith.constant dense<0.000000e+00> : vector<4x8xf32>
    %54 = vector.multi_reduction <add>, %53, %cst_43 [2] : vector<4x8x8xf32> to vector<4x8xf32>
    %55 = vector.shape_cast %54 : vector<4x8xf32> to vector<4x8x1xf32>
    %56 = tpu.reciprocal %55 {approx = true} : vector<4x8x1xf32> -> vector<4x8x1xf32>
    %57 = vector.broadcast %56 : vector<4x8x1xf32> to vector<4x8x8xf32>
    %58 = arith.mulf %53, %57 : vector<4x8x8xf32>
    "tpu.trace_start"() <{level = 10 : i32, message = "nqk,nkd->nqd"}> : () -> ()
    %cst_44 = arith.constant dense<0.000000e+00> : vector<4x8x8xf32>
    %59 = tpu.matmul %58, %47, %cst_44 {dimension_numbers = #tpu.dot_dimension_numbers<[2], [1], [1], [2], [0, 0, 0, 1, 1, 2], [0], [0]>} : vector<4x8x8xf32>, vector<4x8x8xf32>, vector<4x8x8xf32> -> vector<4x8x8xf32>
    "tpu.trace_stop"() : () -> ()
    %60 = arith.truncf %59 : vector<4x8x8xf32> to vector<4x8x8xbf16>
    %c0_45 = arith.constant 0 : index
    %c0_46 = arith.constant 0 : index
    %c0_47 = arith.constant 0 : index
    %c0_48 = arith.constant 0 : index
    %61 = vector.load %arg6[%c0_45, %c0_46, %c0_47, %c0_48] : memref<2x4x8x32xbf16, #tpu.memory_space<vmem>>, vector<1x4x8x32xbf16>
    %62 = vector.shape_cast %61 : vector<1x4x8x32xbf16> to vector<4x8x32xbf16>
    "tpu.trace_start"() <{level = 10 : i32, message = "nqd,ndh->nqh"}> : () -> ()
    %cst_49 = arith.constant dense<0.000000e+00> : vector<4x8x32xf32>
    %63 = tpu.matmul %60, %62, %cst_49 {dimension_numbers = #tpu.dot_dimension_numbers<[2], [1], [1], [2], [0, 0, 0, 1, 1, 2], [0], [0]>} : vector<4x8x8xbf16>, vector<4x8x32xbf16>, vector<4x8x32xf32> -> vector<4x8x32xf32>
    "tpu.trace_stop"() : () -> ()
    %cst_50 = arith.constant dense<0.000000e+00> : vector<8x32xf32>
    %64 = vector.multi_reduction <add>, %63, %cst_50 [0] : vector<4x8x32xf32> to vector<8x32xf32>
    %c0_51 = arith.constant 0 : index
    %c0_52 = arith.constant 0 : index
    %c0_53 = arith.constant 0 : index
    %65 = vector.load %arg3[%c0_51, %c0_52, %c0_53] : memref<2x8x128xf32, #tpu.memory_space<vmem>>, vector<1x1x32xf32>
    %66 = vector.shape_cast %65 : vector<1x1x32xf32> to vector<1x32xf32>
    %67 = vector.broadcast %66 : vector<1x32xf32> to vector<8x32xf32>
    %68 = arith.addf %64, %67 : vector<8x32xf32>
    %69 = arith.addf %68, %23 : vector<8x32xf32>
    %c0_54 = arith.constant 0 : index
    %c1_55 = arith.constant 1 : index
    %c0_56 = arith.constant 0 : index
    %70 = vector.load %arg3[%c0_54, %c1_55, %c0_56] : memref<2x8x128xf32, #tpu.memory_space<vmem>>, vector<1x1x32xf32>
    %71 = vector.shape_cast %70 : vector<1x1x32xf32> to vector<1x32xf32>
    %c0_57 = arith.constant 0 : index
    %c2_58 = arith.constant 2 : index
    %c0_59 = arith.constant 0 : index
    %72 = vector.load %arg3[%c0_57, %c2_58, %c0_59] : memref<2x8x128xf32, #tpu.memory_space<vmem>>, vector<1x1x32xf32>
    %73 = vector.shape_cast %72 : vector<1x1x32xf32> to vector<1x32xf32>
    %cst_60 = arith.constant dense<0.000000e+00> : vector<8xf32>
    %74 = vector.multi_reduction <add>, %69, %cst_60 [1] : vector<8x32xf32> to vector<8xf32>
    %75 = vector.shape_cast %74 : vector<8xf32> to vector<8x1xf32>
    %cst_61 = arith.constant 3.200000e+01 : f32
    %76 = vector.broadcast %cst_61 : f32 to vector<8x1xf32>
    %77 = arith.divf %75, %76 : vector<8x1xf32>
    %78 = vector.broadcast %77 : vector<8x1xf32> to vector<8x32xf32>
    %79 = arith.subf %69, %78 : vector<8x32xf32>
    %80 = arith.mulf %79, %79 : vector<8x32xf32>
    %cst_62 = arith.constant dense<0.000000e+00> : vector<8xf32>
    %81 = vector.multi_reduction <add>, %80, %cst_62 [1] : vector<8x32xf32> to vector<8xf32>
    %82 = vector.shape_cast %81 : vector<8xf32> to vector<8x1xf32>
    %cst_63 = arith.constant 3.200000e+01 : f32
    %83 = vector.broadcast %cst_63 : f32 to vector<8x1xf32>
    %84 = arith.divf %82, %83 : vector<8x1xf32>
    %cst_64 = arith.constant 9.99999996E-13 : f32
    %85 = vector.broadcast %cst_64 : f32 to vector<8x1xf32>
    %86 = arith.addf %84, %85 : vector<8x1xf32>
    %87 = math.rsqrt %86 : vector<8x1xf32>
    %88 = vector.broadcast %87 : vector<8x1xf32> to vector<8x32xf32>
    %89 = arith.mulf %79, %88 : vector<8x32xf32>
    %90 = vector.broadcast %71 : vector<1x32xf32> to vector<8x32xf32>
    %91 = arith.mulf %89, %90 : vector<8x32xf32>
    %92 = vector.broadcast %73 : vector<1x32xf32> to vector<8x32xf32>
    %93 = arith.addf %91, %92 : vector<8x32xf32>
    %94 = arith.truncf %93 : vector<8x32xf32> to vector<8x32xbf16>
    %c0_65 = arith.constant 0 : index
    %c0_66 = arith.constant 0 : index
    %c0_67 = arith.constant 0 : index
    %95 = vector.load %arg7[%c0_65, %c0_66, %c0_67] : memref<2x32x64xbf16, #tpu.memory_space<vmem>>, vector<1x32x64xbf16>
    %96 = vector.shape_cast %95 : vector<1x32x64xbf16> to vector<32x64xbf16>
    %cst_68 = arith.constant dense<0.000000e+00> : vector<8x64xf32>
    %97 = tpu.matmul %94, %96, %cst_68 {dimension_numbers = #tpu.dot_dimension_numbers<[1], [0], [0], [1], [0, 0, 1, 1], [], []>} : vector<8x32xbf16>, vector<32x64xbf16>, vector<8x64xf32> -> vector<8x64xf32>
    %c0_69 = arith.constant 0 : index
    %c3 = arith.constant 3 : index
    %c0_70 = arith.constant 0 : index
    %98 = vector.load %arg3[%c0_69, %c3, %c0_70] : memref<2x8x128xf32, #tpu.memory_space<vmem>>, vector<1x1x64xf32>
    %99 = vector.shape_cast %98 : vector<1x1x64xf32> to vector<1x64xf32>
    %100 = vector.broadcast %99 : vector<1x64xf32> to vector<8x64xf32>
    %101 = arith.addf %97, %100 : vector<8x64xf32>
    %cst_71 = arith.constant 5.000000e-01 : f32
    %102 = vector.broadcast %cst_71 : f32 to vector<8x64xf32>
    %103 = arith.mulf %102, %101 : vector<8x64xf32>
    %cst_72 = arith.constant 0.707106769 : f32
    %104 = vector.broadcast %cst_72 : f32 to vector<8x64xf32>
    %105 = arith.mulf %101, %104 : vector<8x64xf32>
    %106 = math.erf %105 : vector<8x64xf32>
    %cst_73 = arith.constant 1.000000e+00 : f32
    %107 = vector.broadcast %cst_73 : f32 to vector<8x64xf32>
    %108 = arith.addf %107, %106 : vector<8x64xf32>
    %109 = arith.mulf %103, %108 : vector<8x64xf32>
    %110 = arith.truncf %109 : vector<8x64xf32> to vector<8x64xbf16>
    %c0_74 = arith.constant 0 : index
    %c0_75 = arith.constant 0 : index
    %c0_76 = arith.constant 0 : index
    %111 = vector.load %arg8[%c0_74, %c0_75, %c0_76] : memref<2x64x32xbf16, #tpu.memory_space<vmem>>, vector<1x64x32xbf16>
    %112 = vector.shape_cast %111 : vector<1x64x32xbf16> to vector<64x32xbf16>
    %cst_77 = arith.constant dense<0.000000e+00> : vector<8x32xf32>
    %113 = tpu.matmul %110, %112, %cst_77 {dimension_numbers = #tpu.dot_dimension_numbers<[1], [0], [0], [1], [0, 0, 1, 1], [], []>} : vector<8x64xbf16>, vector<64x32xbf16>, vector<8x32xf32> -> vector<8x32xf32>
    %c0_78 = arith.constant 0 : index
    %c4 = arith.constant 4 : index
    %c0_79 = arith.constant 0 : index
    %114 = vector.load %arg3[%c0_78, %c4, %c0_79] : memref<2x8x128xf32, #tpu.memory_space<vmem>>, vector<1x1x32xf32>
    %115 = vector.shape_cast %114 : vector<1x1x32xf32> to vector<1x32xf32>
    %116 = vector.broadcast %115 : vector<1x32xf32> to vector<8x32xf32>
    %117 = arith.addf %113, %116 : vector<8x32xf32>
    %118 = arith.addf %117, %93 : vector<8x32xf32>
    %c0_80 = arith.constant 0 : index
    %c5 = arith.constant 5 : index
    %c0_81 = arith.constant 0 : index
    %119 = vector.load %arg3[%c0_80, %c5, %c0_81] : memref<2x8x128xf32, #tpu.memory_space<vmem>>, vector<1x1x32xf32>
    %120 = vector.shape_cast %119 : vector<1x1x32xf32> to vector<1x32xf32>
    %c0_82 = arith.constant 0 : index
    %c6 = arith.constant 6 : index
    %c0_83 = arith.constant 0 : index
    %121 = vector.load %arg3[%c0_82, %c6, %c0_83] : memref<2x8x128xf32, #tpu.memory_space<vmem>>, vector<1x1x32xf32>
    %122 = vector.shape_cast %121 : vector<1x1x32xf32> to vector<1x32xf32>
    %cst_84 = arith.constant dense<0.000000e+00> : vector<8xf32>
    %123 = vector.multi_reduction <add>, %118, %cst_84 [1] : vector<8x32xf32> to vector<8xf32>
    %124 = vector.shape_cast %123 : vector<8xf32> to vector<8x1xf32>
    %cst_85 = arith.constant 3.200000e+01 : f32
    %125 = vector.broadcast %cst_85 : f32 to vector<8x1xf32>
    %126 = arith.divf %124, %125 : vector<8x1xf32>
    %127 = vector.broadcast %126 : vector<8x1xf32> to vector<8x32xf32>
    %128 = arith.subf %118, %127 : vector<8x32xf32>
    %129 = arith.mulf %128, %128 : vector<8x32xf32>
    %cst_86 = arith.constant dense<0.000000e+00> : vector<8xf32>
    %130 = vector.multi_reduction <add>, %129, %cst_86 [1] : vector<8x32xf32> to vector<8xf32>
    %131 = vector.shape_cast %130 : vector<8xf32> to vector<8x1xf32>
    %cst_87 = arith.constant 3.200000e+01 : f32
    %132 = vector.broadcast %cst_87 : f32 to vector<8x1xf32>
    %133 = arith.divf %131, %132 : vector<8x1xf32>
    %cst_88 = arith.constant 9.99999996E-13 : f32
    %134 = vector.broadcast %cst_88 : f32 to vector<8x1xf32>
    %135 = arith.addf %133, %134 : vector<8x1xf32>
    %136 = math.rsqrt %135 : vector<8x1xf32>
    %137 = vector.broadcast %136 : vector<8x1xf32> to vector<8x32xf32>
    %138 = arith.mulf %128, %137 : vector<8x32xf32>
    %139 = vector.broadcast %120 : vector<1x32xf32> to vector<8x32xf32>
    %140 = arith.mulf %138, %139 : vector<8x32xf32>
    %141 = vector.broadcast %122 : vector<1x32xf32> to vector<8x32xf32>
    %142 = arith.addf %140, %141 : vector<8x32xf32>
    %143 = arith.truncf %142 : vector<8x32xf32> to vector<8x32xbf16>
    %144 = vector.shape_cast %143 : vector<8x32xbf16> to vector<1x8x32xbf16>
    %145 = vector.broadcast %144 : vector<1x8x32xbf16> to vector<4x8x32xbf16>
    %c1_89 = arith.constant 1 : index
    %c0_90 = arith.constant 0 : index
    %c0_91 = arith.constant 0 : index
    %c0_92 = arith.constant 0 : index
    %c0_93 = arith.constant 0 : index
    %146 = vector.load %arg5[%c1_89, %c0_90, %c0_91, %c0_92, %c0_93] : memref<2x3x4x32x8xbf16, #tpu.memory_space<vmem>>, vector<1x1x4x32x8xbf16>
    %147 = vector.shape_cast %146 : vector<1x1x4x32x8xbf16> to vector<4x32x8xbf16>
    "tpu.trace_start"() <{level = 10 : i32, message = "nsh,nhd->nsd"}> : () -> ()
    %cst_94 = arith.constant dense<0.000000e+00> : vector<4x8x8xf32>
    %148 = tpu.matmul %145, %147, %cst_94 {dimension_numbers = #tpu.dot_dimension_numbers<[2], [1], [1], [2], [0, 0, 0, 1, 1, 2], [0], [0]>} : vector<4x8x32xbf16>, vector<4x32x8xbf16>, vector<4x8x8xf32> -> vector<4x8x8xf32>
    "tpu.trace_stop"() : () -> ()
    %c1_95 = arith.constant 1 : index
    %c0_96 = arith.constant 0 : index
    %c0_97 = arith.constant 0 : index
    %c0_98 = arith.constant 0 : index
    %c0_99 = arith.constant 0 : index
    %149 = vector.load %arg4[%c1_95, %c0_96, %c0_97, %c0_98, %c0_99] : memref<2x3x4x1x8xf32, #tpu.memory_space<vmem>>, vector<1x1x4x1x8xf32>
    %150 = vector.shape_cast %149 : vector<1x1x4x1x8xf32> to vector<4x1x8xf32>
    %151 = vector.broadcast %150 : vector<4x1x8xf32> to vector<4x8x8xf32>
    %152 = arith.addf %148, %151 : vector<4x8x8xf32>
    %c1_100 = arith.constant 1 : index
    %c1_101 = arith.constant 1 : index
    %c0_102 = arith.constant 0 : index
    %c0_103 = arith.constant 0 : index
    %c0_104 = arith.constant 0 : index
    %153 = vector.load %arg5[%c1_100, %c1_101, %c0_102, %c0_103, %c0_104] : memref<2x3x4x32x8xbf16, #tpu.memory_space<vmem>>, vector<1x1x4x32x8xbf16>
    %154 = vector.shape_cast %153 : vector<1x1x4x32x8xbf16> to vector<4x32x8xbf16>
    "tpu.trace_start"() <{level = 10 : i32, message = "nsh,nhd->nsd"}> : () -> ()
    %cst_105 = arith.constant dense<0.000000e+00> : vector<4x8x8xf32>
    %155 = tpu.matmul %145, %154, %cst_105 {dimension_numbers = #tpu.dot_dimension_numbers<[2], [1], [1], [2], [0, 0, 0, 1, 1, 2], [0], [0]>} : vector<4x8x32xbf16>, vector<4x32x8xbf16>, vector<4x8x8xf32> -> vector<4x8x8xf32>
    "tpu.trace_stop"() : () -> ()
    %c1_106 = arith.constant 1 : index
    %c1_107 = arith.constant 1 : index
    %c0_108 = arith.constant 0 : index
    %c0_109 = arith.constant 0 : index
    %c0_110 = arith.constant 0 : index
    %156 = vector.load %arg4[%c1_106, %c1_107, %c0_108, %c0_109, %c0_110] : memref<2x3x4x1x8xf32, #tpu.memory_space<vmem>>, vector<1x1x4x1x8xf32>
    %157 = vector.shape_cast %156 : vector<1x1x4x1x8xf32> to vector<4x1x8xf32>
    %158 = vector.broadcast %157 : vector<4x1x8xf32> to vector<4x8x8xf32>
    %159 = arith.addf %155, %158 : vector<4x8x8xf32>
    %c1_111 = arith.constant 1 : index
    %c2_112 = arith.constant 2 : index
    %c0_113 = arith.constant 0 : index
    %c0_114 = arith.constant 0 : index
    %c0_115 = arith.constant 0 : index
    %160 = vector.load %arg5[%c1_111, %c2_112, %c0_113, %c0_114, %c0_115] : memref<2x3x4x32x8xbf16, #tpu.memory_space<vmem>>, vector<1x1x4x32x8xbf16>
    %161 = vector.shape_cast %160 : vector<1x1x4x32x8xbf16> to vector<4x32x8xbf16>
    "tpu.trace_start"() <{level = 10 : i32, message = "nsh,nhd->nsd"}> : () -> ()
    %cst_116 = arith.constant dense<0.000000e+00> : vector<4x8x8xf32>
    %162 = tpu.matmul %145, %161, %cst_116 {dimension_numbers = #tpu.dot_dimension_numbers<[2], [1], [1], [2], [0, 0, 0, 1, 1, 2], [0], [0]>} : vector<4x8x32xbf16>, vector<4x32x8xbf16>, vector<4x8x8xf32> -> vector<4x8x8xf32>
    "tpu.trace_stop"() : () -> ()
    %c1_117 = arith.constant 1 : index
    %c2_118 = arith.constant 2 : index
    %c0_119 = arith.constant 0 : index
    %c0_120 = arith.constant 0 : index
    %c0_121 = arith.constant 0 : index
    %163 = vector.load %arg4[%c1_117, %c2_118, %c0_119, %c0_120, %c0_121] : memref<2x3x4x1x8xf32, #tpu.memory_space<vmem>>, vector<1x1x4x1x8xf32>
    %164 = vector.shape_cast %163 : vector<1x1x4x1x8xf32> to vector<4x1x8xf32>
    %165 = vector.broadcast %164 : vector<4x1x8xf32> to vector<4x8x8xf32>
    %166 = arith.addf %162, %165 : vector<4x8x8xf32>
    "tpu.trace_start"() <{level = 10 : i32, message = "nqd,nkd->nqk"}> : () -> ()
    %cst_122 = arith.constant dense<0.000000e+00> : vector<4x8x8xf32>
    %167 = tpu.matmul %152, %159, %cst_122 {dimension_numbers = #tpu.dot_dimension_numbers<[2], [2], [1], [1], [0, 0, 0, 1, 1, 1], [0], [0]>} : vector<4x8x8xf32>, vector<4x8x8xf32>, vector<4x8x8xf32> -> vector<4x8x8xf32>
    "tpu.trace_stop"() : () -> ()
    %cst_123 = arith.constant dense<0xFF800000> : vector<4x8xf32>
    %168 = vector.multi_reduction <maximumf>, %167, %cst_123 [2] : vector<4x8x8xf32> to vector<4x8xf32>
    %169 = vector.shape_cast %168 : vector<4x8xf32> to vector<4x8x1xf32>
    %170 = vector.broadcast %169 : vector<4x8x1xf32> to vector<4x8x8xf32>
    %171 = arith.subf %167, %170 : vector<4x8x8xf32>
    %172 = math.exp %171 : vector<4x8x8xf32>
    %cst_124 = arith.constant dense<0.000000e+00> : vector<4x8xf32>
    %173 = vector.multi_reduction <add>, %172, %cst_124 [2] : vector<4x8x8xf32> to vector<4x8xf32>
    %174 = vector.shape_cast %173 : vector<4x8xf32> to vector<4x8x1xf32>
    %175 = tpu.reciprocal %174 {approx = true} : vector<4x8x1xf32> -> vector<4x8x1xf32>
    %176 = vector.broadcast %175 : vector<4x8x1xf32> to vector<4x8x8xf32>
    %177 = arith.mulf %172, %176 : vector<4x8x8xf32>
    "tpu.trace_start"() <{level = 10 : i32, message = "nqk,nkd->nqd"}> : () -> ()
    %cst_125 = arith.constant dense<0.000000e+00> : vector<4x8x8xf32>
    %178 = tpu.matmul %177, %166, %cst_125 {dimension_numbers = #tpu.dot_dimension_numbers<[2], [1], [1], [2], [0, 0, 0, 1, 1, 2], [0], [0]>} : vector<4x8x8xf32>, vector<4x8x8xf32>, vector<4x8x8xf32> -> vector<4x8x8xf32>
    "tpu.trace_stop"() : () -> ()
    %179 = arith.truncf %178 : vector<4x8x8xf32> to vector<4x8x8xbf16>
    %c1_126 = arith.constant 1 : index
    %c0_127 = arith.constant 0 : index
    %c0_128 = arith.constant 0 : index
    %c0_129 = arith.constant 0 : index
    %180 = vector.load %arg6[%c1_126, %c0_127, %c0_128, %c0_129] : memref<2x4x8x32xbf16, #tpu.memory_space<vmem>>, vector<1x4x8x32xbf16>
    %181 = vector.shape_cast %180 : vector<1x4x8x32xbf16> to vector<4x8x32xbf16>
    "tpu.trace_start"() <{level = 10 : i32, message = "nqd,ndh->nqh"}> : () -> ()
    %cst_130 = arith.constant dense<0.000000e+00> : vector<4x8x32xf32>
    %182 = tpu.matmul %179, %181, %cst_130 {dimension_numbers = #tpu.dot_dimension_numbers<[2], [1], [1], [2], [0, 0, 0, 1, 1, 2], [0], [0]>} : vector<4x8x8xbf16>, vector<4x8x32xbf16>, vector<4x8x32xf32> -> vector<4x8x32xf32>
    "tpu.trace_stop"() : () -> ()
    %cst_131 = arith.constant dense<0.000000e+00> : vector<8x32xf32>
    %183 = vector.multi_reduction <add>, %182, %cst_131 [0] : vector<4x8x32xf32> to vector<8x32xf32>
    %c1_132 = arith.constant 1 : index
    %c0_133 = arith.constant 0 : index
    %c0_134 = arith.constant 0 : index
    %184 = vector.load %arg3[%c1_132, %c0_133, %c0_134] : memref<2x8x128xf32, #tpu.memory_space<vmem>>, vector<1x1x32xf32>
    %185 = vector.shape_cast %184 : vector<1x1x32xf32> to vector<1x32xf32>
    %186 = vector.broadcast %185 : vector<1x32xf32> to vector<8x32xf32>
    %187 = arith.addf %183, %186 : vector<8x32xf32>
    %188 = arith.addf %187, %142 : vector<8x32xf32>
    %c1_135 = arith.constant 1 : index
    %c1_136 = arith.constant 1 : index
    %c0_137 = arith.constant 0 : index
    %189 = vector.load %arg3[%c1_135, %c1_136, %c0_137] : memref<2x8x128xf32, #tpu.memory_space<vmem>>, vector<1x1x32xf32>
    %190 = vector.shape_cast %189 : vector<1x1x32xf32> to vector<1x32xf32>
    %c1_138 = arith.constant 1 : index
    %c2_139 = arith.constant 2 : index
    %c0_140 = arith.constant 0 : index
    %191 = vector.load %arg3[%c1_138, %c2_139, %c0_140] : memref<2x8x128xf32, #tpu.memory_space<vmem>>, vector<1x1x32xf32>
    %192 = vector.shape_cast %191 : vector<1x1x32xf32> to vector<1x32xf32>
    %cst_141 = arith.constant dense<0.000000e+00> : vector<8xf32>
    %193 = vector.multi_reduction <add>, %188, %cst_141 [1] : vector<8x32xf32> to vector<8xf32>
    %194 = vector.shape_cast %193 : vector<8xf32> to vector<8x1xf32>
    %cst_142 = arith.constant 3.200000e+01 : f32
    %195 = vector.broadcast %cst_142 : f32 to vector<8x1xf32>
    %196 = arith.divf %194, %195 : vector<8x1xf32>
    %197 = vector.broadcast %196 : vector<8x1xf32> to vector<8x32xf32>
    %198 = arith.subf %188, %197 : vector<8x32xf32>
    %199 = arith.mulf %198, %198 : vector<8x32xf32>
    %cst_143 = arith.constant dense<0.000000e+00> : vector<8xf32>
    %200 = vector.multi_reduction <add>, %199, %cst_143 [1] : vector<8x32xf32> to vector<8xf32>
    %201 = vector.shape_cast %200 : vector<8xf32> to vector<8x1xf32>
    %cst_144 = arith.constant 3.200000e+01 : f32
    %202 = vector.broadcast %cst_144 : f32 to vector<8x1xf32>
    %203 = arith.divf %201, %202 : vector<8x1xf32>
    %cst_145 = arith.constant 9.99999996E-13 : f32
    %204 = vector.broadcast %cst_145 : f32 to vector<8x1xf32>
    %205 = arith.addf %203, %204 : vector<8x1xf32>
    %206 = math.rsqrt %205 : vector<8x1xf32>
    %207 = vector.broadcast %206 : vector<8x1xf32> to vector<8x32xf32>
    %208 = arith.mulf %198, %207 : vector<8x32xf32>
    %209 = vector.broadcast %190 : vector<1x32xf32> to vector<8x32xf32>
    %210 = arith.mulf %208, %209 : vector<8x32xf32>
    %211 = vector.broadcast %192 : vector<1x32xf32> to vector<8x32xf32>
    %212 = arith.addf %210, %211 : vector<8x32xf32>
    %213 = arith.truncf %212 : vector<8x32xf32> to vector<8x32xbf16>
    %c1_146 = arith.constant 1 : index
    %c0_147 = arith.constant 0 : index
    %c0_148 = arith.constant 0 : index
    %214 = vector.load %arg7[%c1_146, %c0_147, %c0_148] : memref<2x32x64xbf16, #tpu.memory_space<vmem>>, vector<1x32x64xbf16>
    %215 = vector.shape_cast %214 : vector<1x32x64xbf16> to vector<32x64xbf16>
    %cst_149 = arith.constant dense<0.000000e+00> : vector<8x64xf32>
    %216 = tpu.matmul %213, %215, %cst_149 {dimension_numbers = #tpu.dot_dimension_numbers<[1], [0], [0], [1], [0, 0, 1, 1], [], []>} : vector<8x32xbf16>, vector<32x64xbf16>, vector<8x64xf32> -> vector<8x64xf32>
    %c1_150 = arith.constant 1 : index
    %c3_151 = arith.constant 3 : index
    %c0_152 = arith.constant 0 : index
    %217 = vector.load %arg3[%c1_150, %c3_151, %c0_152] : memref<2x8x128xf32, #tpu.memory_space<vmem>>, vector<1x1x64xf32>
    %218 = vector.shape_cast %217 : vector<1x1x64xf32> to vector<1x64xf32>
    %219 = vector.broadcast %218 : vector<1x64xf32> to vector<8x64xf32>
    %220 = arith.addf %216, %219 : vector<8x64xf32>
    %cst_153 = arith.constant 5.000000e-01 : f32
    %221 = vector.broadcast %cst_153 : f32 to vector<8x64xf32>
    %222 = arith.mulf %221, %220 : vector<8x64xf32>
    %cst_154 = arith.constant 0.707106769 : f32
    %223 = vector.broadcast %cst_154 : f32 to vector<8x64xf32>
    %224 = arith.mulf %220, %223 : vector<8x64xf32>
    %225 = math.erf %224 : vector<8x64xf32>
    %cst_155 = arith.constant 1.000000e+00 : f32
    %226 = vector.broadcast %cst_155 : f32 to vector<8x64xf32>
    %227 = arith.addf %226, %225 : vector<8x64xf32>
    %228 = arith.mulf %222, %227 : vector<8x64xf32>
    %229 = arith.truncf %228 : vector<8x64xf32> to vector<8x64xbf16>
    %c1_156 = arith.constant 1 : index
    %c0_157 = arith.constant 0 : index
    %c0_158 = arith.constant 0 : index
    %230 = vector.load %arg8[%c1_156, %c0_157, %c0_158] : memref<2x64x32xbf16, #tpu.memory_space<vmem>>, vector<1x64x32xbf16>
    %231 = vector.shape_cast %230 : vector<1x64x32xbf16> to vector<64x32xbf16>
    %cst_159 = arith.constant dense<0.000000e+00> : vector<8x32xf32>
    %232 = tpu.matmul %229, %231, %cst_159 {dimension_numbers = #tpu.dot_dimension_numbers<[1], [0], [0], [1], [0, 0, 1, 1], [], []>} : vector<8x64xbf16>, vector<64x32xbf16>, vector<8x32xf32> -> vector<8x32xf32>
    %c1_160 = arith.constant 1 : index
    %c4_161 = arith.constant 4 : index
    %c0_162 = arith.constant 0 : index
    %233 = vector.load %arg3[%c1_160, %c4_161, %c0_162] : memref<2x8x128xf32, #tpu.memory_space<vmem>>, vector<1x1x32xf32>
    %234 = vector.shape_cast %233 : vector<1x1x32xf32> to vector<1x32xf32>
    %235 = vector.broadcast %234 : vector<1x32xf32> to vector<8x32xf32>
    %236 = arith.addf %232, %235 : vector<8x32xf32>
    %237 = arith.addf %236, %212 : vector<8x32xf32>
    %c1_163 = arith.constant 1 : index
    %c5_164 = arith.constant 5 : index
    %c0_165 = arith.constant 0 : index
    %238 = vector.load %arg3[%c1_163, %c5_164, %c0_165] : memref<2x8x128xf32, #tpu.memory_space<vmem>>, vector<1x1x32xf32>
    %239 = vector.shape_cast %238 : vector<1x1x32xf32> to vector<1x32xf32>
    %c1_166 = arith.constant 1 : index
    %c6_167 = arith.constant 6 : index
    %c0_168 = arith.constant 0 : index
    %240 = vector.load %arg3[%c1_166, %c6_167, %c0_168] : memref<2x8x128xf32, #tpu.memory_space<vmem>>, vector<1x1x32xf32>
    %241 = vector.shape_cast %240 : vector<1x1x32xf32> to vector<1x32xf32>
    %cst_169 = arith.constant dense<0.000000e+00> : vector<8xf32>
    %242 = vector.multi_reduction <add>, %237, %cst_169 [1] : vector<8x32xf32> to vector<8xf32>
    %243 = vector.shape_cast %242 : vector<8xf32> to vector<8x1xf32>
    %cst_170 = arith.constant 3.200000e+01 : f32
    %244 = vector.broadcast %cst_170 : f32 to vector<8x1xf32>
    %245 = arith.divf %243, %244 : vector<8x1xf32>
    %246 = vector.broadcast %245 : vector<8x1xf32> to vector<8x32xf32>
    %247 = arith.subf %237, %246 : vector<8x32xf32>
    %248 = arith.mulf %247, %247 : vector<8x32xf32>
    %cst_171 = arith.constant dense<0.000000e+00> : vector<8xf32>
    %249 = vector.multi_reduction <add>, %248, %cst_171 [1] : vector<8x32xf32> to vector<8xf32>
    %250 = vector.shape_cast %249 : vector<8xf32> to vector<8x1xf32>
    %cst_172 = arith.constant 3.200000e+01 : f32
    %251 = vector.broadcast %cst_172 : f32 to vector<8x1xf32>
    %252 = arith.divf %250, %251 : vector<8x1xf32>
    %cst_173 = arith.constant 9.99999996E-13 : f32
    %253 = vector.broadcast %cst_173 : f32 to vector<8x1xf32>
    %254 = arith.addf %252, %253 : vector<8x1xf32>
    %255 = math.rsqrt %254 : vector<8x1xf32>
    %256 = vector.broadcast %255 : vector<8x1xf32> to vector<8x32xf32>
    %257 = arith.mulf %247, %256 : vector<8x32xf32>
    %258 = vector.broadcast %239 : vector<1x32xf32> to vector<8x32xf32>
    %259 = arith.mulf %257, %258 : vector<8x32xf32>
    %260 = vector.broadcast %241 : vector<1x32xf32> to vector<8x32xf32>
    %261 = arith.addf %259, %260 : vector<8x32xf32>
    %262 = vector.extract_strided_slice %261 {offsets = [0, 0], sizes = [1, 32], strides = [1, 1]} : vector<8x32xf32> to vector<1x32xf32>
    %c0_174 = arith.constant 0 : index
    %c0_175 = arith.constant 0 : index
    %263 = vector.load %arg9[%c0_174, %c0_175] : memref<32x32xf32, #tpu.memory_space<vmem>>, vector<32x32xf32>
    %cst_176 = arith.constant dense<0.000000e+00> : vector<1x32xf32>
    %264 = tpu.matmul %262, %263, %cst_176 {dimension_numbers = #tpu.dot_dimension_numbers<[1], [0], [0], [1], [0, 0, 1, 1], [], []>} : vector<1x32xf32>, vector<32x32xf32>, vector<1x32xf32> -> vector<1x32xf32>
    %c2_177 = arith.constant 2 : index
    %c0_178 = arith.constant 0 : index
    %265 = vector.load %arg2[%c2_177, %c0_178] : memref<8x128xf32, #tpu.memory_space<vmem>>, vector<1x32xf32>
    %266 = arith.addf %264, %265 : vector<1x32xf32>
    %267 = math.tanh %266 : vector<1x32xf32>
    %268 = vector.shape_cast %267 : vector<1x32xf32> to vector<1x1x32xf32>
    %c0_179 = arith.constant 0 : index
    %c0_180 = arith.constant 0 : index
    %c0_181 = arith.constant 0 : index
    %269 = vector.load %arg10[%c0_179, %c0_180, %c0_181] : memref<1x1x32xf32, #tpu.memory_space<vmem>>, vector<1x1x32xf32>
    tpu.vector_store %arg10[%c0_179, %c0_180, %c0_181], %268 {strides = array<i32>} : memref<1x1x32xf32, #tpu.memory_space<vmem>>, vector<1x1x32xf32>,
    return
  }
  func.func @transform_0(%arg0: i32) -> (i32, i32, i32) {
    %c0_i32 = arith.constant 0 : i32
    %c0_i32_0 = arith.constant 0 : i32
    %c0_i32_1 = arith.constant 0 : i32
    return %arg0, %c0_i32, %c0_i32_0 : i32, i32, i32
  }
  func.func @transform_1(%arg0: i32) -> (i32, i32) {
    %c0_i32 = arith.constant 0 : i32
    %c0_i32_0 = arith.constant 0 : i32
    %c0_i32_1 = arith.constant 0 : i32
    return %c0_i32, %c0_i32_0 : i32, i32
  }
  func.func @transform_2(%arg0: i32) -> (i32, i32, i32) {
    %c0_i32 = arith.constant 0 : i32
    %c0_i32_0 = arith.constant 0 : i32
    %c0_i32_1 = arith.constant 0 : i32
    %c0_i32_2 = arith.constant 0 : i32
    return %c0_i32, %c0_i32_0, %c0_i32_1 : i32, i32, i32
  }
  func.func @transform_3(%arg0: i32) -> (i32, i32, i32, i32, i32) {
    %c0_i32 = arith.constant 0 : i32
    %c0_i32_0 = arith.constant 0 : i32
    %c0_i32_1 = arith.constant 0 : i32
    %c0_i32_2 = arith.constant 0 : i32
    %c0_i32_3 = arith.constant 0 : i32
    %c0_i32_4 = arith.constant 0 : i32
    return %c0_i32, %c0_i32_0, %c0_i32_1, %c0_i32_2, %c0_i32_3 : i32, i32, i32, i32, i32
  }
  func.func @transform_4(%arg0: i32) -> (i32, i32, i32, i32, i32) {
    %c0_i32 = arith.constant 0 : i32
    %c0_i32_0 = arith.constant 0 : i32
    %c0_i32_1 = arith.constant 0 : i32
    %c0_i32_2 = arith.constant 0 : i32
    %c0_i32_3 = arith.constant 0 : i32
    %c0_i32_4 = arith.constant 0 : i32
    return %c0_i32, %c0_i32_0, %c0_i32_1, %c0_i32_2, %c0_i32_3 : i32, i32, i32, i32, i32
  }
  func.func @transform_5(%arg0: i32) -> (i32, i32, i32, i32) {
    %c0_i32 = arith.constant 0 : i32
    %c0_i32_0 = arith.constant 0 : i32
    %c0_i32_1 = arith.constant 0 : i32
    %c0_i32_2 = arith.constant 0 : i32
    %c0_i32_3 = arith.constant 0 : i32
    return %c0_i32, %c0_i32_0, %c0_i32_1, %c0_i32_2 : i32, i32, i32, i32
  }
  func.func @transform_6(%arg0: i32) -> (i32, i32, i32) {
    %c0_i32 = arith.constant 0 : i32
    %c0_i32_0 = arith.constant 0 : i32
    %c0_i32_1 = arith.constant 0 : i32
    %c0_i32_2 = arith.constant 0 : i32
    return %c0_i32, %c0_i32_0, %c0_i32_1 : i32, i32, i32
  }
  func.func @transform_7(%arg0: i32) -> (i32, i32, i32) {
    %c0_i32 = arith.constant 0 : i32
    %c0_i32_0 = arith.constant 0 : i32
    %c0_i32_1 = arith.constant 0 : i32
    %c0_i32_2 = arith.constant 0 : i32
    return %c0_i32, %c0_i32_0, %c0_i32_1 : i32, i32, i32
  }
  func.func @transform_8(%arg0: i32) -> (i32, i32) {
    %c0_i32 = arith.constant 0 : i32
    %c0_i32_0 = arith.constant 0 : i32
    %c0_i32_1 = arith.constant 0 : i32
    return %c0_i32, %c0_i32_0 : i32, i32
  }
  func.func @transform_9(%arg0: i32) -> (i32, i32, i32) {
    %c0_i32 = arith.constant 0 : i32
    %c0_i32_0 = arith.constant 0 : i32
    %c0_i32_1 = arith.constant 0 : i32
    return %arg0, %c0_i32, %c0_i32_0 : i32, i32, i32
  }
}

</mosaic_0001>

<bundles_post_ra>
// kernel: bert_forward.1
= control target key start
LH: loop header
LB: loop body
LE: loop exit
PB: predicated region body
PF: predicated region fallthrough
CT: control target
= control target key end

     0   :  { %14 = vsyncpa [#allocation3], 0  ;;  %s3622_s0 = inlined_call_operand.vmem [shape: f32[2,8,32], index: 0, kind: input, shape index: {}]   ;;  %s3623_s1 = inlined_call_operand.vmem [shape: f32[8,128], index: 1, kind: input, shape index: {}]   ;;  %s3624_s2 = inlined_call_operand.vmem [shape: f32[2,8,128], index: 2, kind: input, shape index: {}]   ;;  %s3625_s3 = inlined_call_operand.vmem [shape: f32[2,3,4,1,8], index: 3, kind: input, shape index: {}]   ;;  %s3626_s4 = inlined_call_operand.vmem [shape: bf16[2,3,4,32,8], index: 4, kind: input, shape index: {}]   ;;  %s3627_s5 = inlined_call_operand.vmem [shape: bf16[2,4,8,32], index: 5, kind: input, shape index: {}]   ;;  %s3628_s6 = inlined_call_operand.vmem [shape: bf16[2,32,64], index: 6, kind: input, shape index: {}]   ;;  %s3629_s7 = inlined_call_operand.vmem [shape: bf16[2,64,32], index: 7, kind: input, shape index: {}]   ;;  %s3630_s8 = inlined_call_operand.vmem [shape: f32[32,32], index: 8, kind: input, shape index: {}]   ;;  %s3631_s9 = inlined_call_operand.hbm [shape: f32[2,1,32], index: 9, kind: output, shape index: {}]  }
   0x1   :  { %16 = vsyncpa [#allocation3 + $0x1], 0  ;;  %s3063_s30 = smov 0   ;;  %s3065_s10 = smov 0  }
   0x2   :  { %s3067_s11 = smov 0   ;;  %s3069_s12 = smov 0  }
   0x3 LB: > { %s3084_s13 = sadd.s32 4294967295, %s3010_s12   ;;  %s2325_s14 = sadd.s32 4294967294, %s3010_s12   ;;  %s3010_s12 = sphi %s3069_s12, %s3637_s12   ;;  %s3006_s11 = sphi %s3067_s11, %s3636_s11   ;;  %s3002_s10 = sphi %s3065_s10, %s3635_s10   ;;  %s2998_s30 = sphi %s3063_s30, %s3634_s30  }
   0x4   : > { %s3088_s15 = sadd.s32 1, %s3010_s12   ;;  %s223_s16 = sadd.s32 1, %s3006_s11 }
   0x5   : > { %s220_s17 = ssub.s32 %s3010_s12, %s3088_s15  ;;  %p233_p0 = scmp.ne.s32.totalorder %s3006_s11, %s3002_s10 }
   0x6   : > { %p221_p1 = scmp.eq.s32.totalorder %s220_s17, 0  ;;  %p234_p2 = scmp.eq.s32.totalorder %s3084_s13, 1 }
   0x7   : > { %p239_p3 = scmp.ne.s32.totalorder %s3002_s10, %s2998_s30  ;;  %p240_p4 = scmp.eq.s32.totalorder %s2325_s14, 1 }
   0x8   : > { %s3099_s18 = scalar_select %p221_p1, %s3006_s11, %s223_s16  }
   0x9   : > { %p3101_p5 = por %p234_p2, %p233_p0  ;;  %p3105_p6 = por %p240_p4, %p239_p3 }
   0xa   : > { %p2328_p7 = scmp.ge.s32.totalorder %s3010_s12, 1  ;;  %p289_p8 = scmp.lt.s32.totalorder %s3010_s12, 3 }
   0xc   : > { %p290_p9 = pnand %p2328_p7, %p289_p8 }
   0xd   : > { %p323_p10 = scmp.lt.s32.totalorder (!%p290_p9), %s3084_s13, 1  ;;  %s321_s24 = sand.u32 (!%p290_p9), 1, %s3002_s10  }
   0xe   : > { %293 = sbr.rel (%p290_p9) target bundleno = 3783 (0xec7), region = 56  ;;  %s2266_s27 = scalar_lea.hbm (!%p290_p9), %s3631_s9, %s3084_s13 }
   0xf   : > { %s322_s28 = scalar_lea.vmem (!%p290_p9), [#allocation2], %s321_s24  ;;  %s2270_s14 = sshll.u32 (!%p290_p9), %s2266_s27, 4  ;;  %s2271_s14 = int_to_ptr.hbm [resolvable:$true] %s2270_s14 }
  0x10   : > { %s2268_s29 = sshll.u32 (!%p290_p9), %s322_s28, 4  ;;  %s2258_s16 = scalar_lea.sflag (!%p290_p9), [#allocation3], %s321_s24  ;;  %s2269_s29 = int_to_ptr.vmem [resolvable:$true] %s2268_s29 }
  0x11   : > { %s2962_s17 = sshra.s32 (!%p290_p9), %s2271_s14, 4  ;;  %s2963_s17 = int_to_ptr.hbm [resolvable:$true] %s2962_s17 }
  0x12   : > { %p2969_p0 = scmp.lt.s32.totalorder (!%p290_p9), %s2963_s17, %s3631_s9 }
  0x13   : > { %s324_s21 = scalar_select %p323_p10, %s3084_s13, 1  ;;  %vm331_vm0 = vcmask 261120   ;;  %v3012_v2 = vmov 32.0   ;;  %v2759_v14 = vld [vmem:[%s3626_s4 + $0x8] sm:$0xff]  ;;  %v2761_v15 = vld [vmem:[%s3626_s4 + $0x18] sm:$0xff]  ;;  %v2758_v18 = vld [vmem:[%s3626_s4] sm:$0xff] }
  0x14   : > { %2898 = vrcp.f32 %v3012_v2  ;;  %v2763_v16 = vld [vmem:[%s3626_s4 + $0x28] sm:$0xff]  ;;  %v2765_v17 = vld [vmem:[%s3626_s4 + $0x38] sm:$0xff]  ;;  %419 = vmatpush.bf16.msra.mxu0 %v2759_v14  ;;  %444 = vmatpush.bf16.msra.mxu1 %v2761_v15  ;;  %v2760_v19 = vld [vmem:[%s3626_s4 + $0x10] sm:$0xff]  ;;  %vm769_vm5 = vcmask 64512   ;;  %vm1021_vm6 = vcmask 1043456   ;;  %vm1248_vm14 = vcmask 523264  }
  0x15   : > { %s2329_s22 = sshll.u32 %s324_s21, 3  ;;  %469 = vmatpush.bf16.msra.mxu2 %v2763_v16  ;;  %494 = vmatpush.bf16.msra.mxu3 %v2765_v17  ;;  %v2762_v20 = vld [vmem:[%s3626_s4 + $0x20] sm:$0xff]  ;;  %v2764_v21 = vld [vmem:[%s3626_s4 + $0x30] sm:$0xff]  ;;  %v2767_v23 = vld [vmem:[%s3626_s4 + $0x48] sm:$0xff]  ;;  %s2964_s21 = scalar_lea.hbm %s2963_s17, 1 }
  0x16   : > { %s326_s25 = scalar_lea.vmem %s3622_s0, %s2329_s22  ;;  %v2769_v24 = vld [vmem:[%s3626_s4 + $0x58] sm:$0xff]  ;;  %v2771_v25 = vld [vmem:[%s3626_s4 + $0x68] sm:$0xff]  ;;  %v2766_v28 = vld [vmem:[%s3626_s4 + $0x40] sm:$0xff]  ;;  %p2965_p11 = scmp.ne.s32.totalorder %s2963_s17, %s2964_s21 }
  0x17   : > { %v328_v0 = vld [vmem:[%s326_s25] sm:$0xff]  ;;  %v2773_v27 = vld [vmem:[%s3626_s4 + $0x78] sm:$0xff]  ;;  %v2768_v29 = vld [vmem:[%s3626_s4 + $0x50] sm:$0xff]  ;;  %s2968_s13 = scalar_lea.hbm %s3631_s9, 2 }
  0x18   : > { %v332_v1 = vsel %vm331_vm0, %v328_v0, 0.0  ;;  %420 = vmatpush.bf16.msra.mxu0 %v2758_v18  ;;  %445 = vmatpush.bf16.msra.mxu1 %v2760_v19  ;;  %v2770_v31 = vld [vmem:[%s3626_s4 + $0x60] sm:$0xff]  ;;  %v2772_v32 = vld [vmem:[%s3626_s4 + $0x70] sm:$0xff]  ;;  %v2775_v46 = vld [vmem:[%s3626_s4 + $0x88] sm:$0xff]  ;;  %p2966_p12 = pnand %p2965_p11, %p3101_p5  ;;  %p2970_p1 = scmp.lt.s32.totalorder %s2968_s13, %s2964_s21 }
  0x19   : > { %333 = vadd.xlane.f32.xlu0 %v332_v1  ;;  %470 = vmatpush.bf16.msra.mxu2 %v2762_v20  ;;  %v2858_v39 = vld [vmem:[%s3623_s1] ss:$0 sm:$0xff]  ;;  %v2859_v41 = vld [vmem:[%s3623_s1 + $0x1] ss:$0 sm:$0xff]  ;;  %v2777_v47 = vld [vmem:[%s3626_s4 + $0x98] sm:$0xff] }
  0x1a   : > { %v2899_v3 = vpop.eup %2898  ;;  %495 = vmatpush.bf16.msra.mxu3 %v2764_v21  ;;  %v2779_v48 = vld [vmem:[%s3626_s4 + $0xa8] sm:$0xff]  ;;  %v2781_v49 = vld [vmem:[%s3626_s4 + $0xb8] sm:$0xff]  ;;  %v2774_v50 = vld [vmem:[%s3626_s4 + $0x80] sm:$0xff]  ;;  %p2967_p13 = pneg %p2966_p12  ;;  %p2971_p2 = por %p2970_p1, %p2969_p0 }
  0x1b   : > { %v336_v4 = vmul.f32 32.0, %v2899_v3  ;;  %vm340_vm1 = vweird.f32 %v2899_v3  ;;  %v2776_v51 = vld [vmem:[%s3626_s4 + $0x90] sm:$0xff]  ;;  %v2778_v52 = vld [vmem:[%s3626_s4 + $0xa0] sm:$0xff]  ;;  %v2868_v21 = vld [vmem:[%s3625_s3 + $0x8] ss:$0 sm:$0xff] }
  0x1c   : > { %553 = vmatpush.bf16.msrb.mxu0 %v2767_v23  ;;  %578 = vmatpush.bf16.msrb.mxu1 %v2769_v24  ;;  %v2780_v53 = vld [vmem:[%s3626_s4 + $0xb0] sm:$0xff]  ;;  %v2864_v60 = vld [vmem:[%s3625_s3 + $0x4] ss:$0 sm:$0xff]  ;;  %v2865_v61 = vld [vmem:[%s3625_s3 + $0x5] ss:$0 sm:$0xff]  ;;  %p2972_p3 = pnand %p2971_p2, %p2967_p13 }
  0x1d   : > { %v337_v5 = vsub.f32 1.0, %v336_v4  ;;  %603 = vmatpush.bf16.msrb.mxu2 %v2771_v25  ;;  %v2861_v1 = vld [vmem:[%s3625_s3 + $0x1] ss:$0 sm:$0xff]  ;;  %v2863_v14 = vld [vmem:[%s3625_s3 + $0x3] ss:$0 sm:$0xff] }
  0x1e   : > { %628 = vmatpush.bf16.msrb.mxu3 %v2773_v27 }
  0x1f   : > { %v338_v6 = vmul.f32 %v2899_v3, %v337_v5 }
  0x20   : > { %554 = vmatpush.bf16.msrb.mxu0 %v2766_v28  ;;  %579 = vmatpush.bf16.msrb.mxu1 %v2768_v29  ;;  %v2870_v29 = vld [vmem:[%s3625_s3 + $0xa] ss:$0 sm:$0xff] }
  0x21   : > { %v339_v7 = vadd.f32 %v2899_v3, %v338_v6  ;;  %604 = vmatpush.bf16.msrb.mxu2 %v2770_v31 }
  0x22   : > { %629 = vmatpush.bf16.msrb.mxu3 %v2772_v32 }
  0x23   : > { %v3117_v8 = vsel %vm340_vm1, %v2899_v3, %v339_v7 }
  0x8c   : > { %v334_v9 = vpop.xlane.xlu0 %333 }
  0x8d   : > { %v342_v10 = vmul.f32 %v3117_v8, %v334_v9  ;;  %v2866_v9 = vld [vmem:[%s3625_s3 + $0x6] ss:$0 sm:$0xff] }
  0x8f   : > { %v343_v11 = vsub.f32 %v328_v0, %v342_v10  ;;  %v2860_v0 = vld [vmem:[%s3625_s3] ss:$0 sm:$0xff]  ;;  %v2867_v10 = vld [vmem:[%s3625_s3 + $0x7] ss:$0 sm:$0xff] }
  0x91   : > { %v344_v12 = vmul.f32 %v343_v11, %v343_v11 }
  0x93   : > { %v345_v13 = vsel %vm331_vm0, %v344_v12, 0.0 }
  0x94   : > { %346 = vadd.xlane.f32.xlu0 %v345_v13 }
 0x107   : > { %v347_v22 = vpop.xlane.xlu0 %346 }
 0x108   : > { %v348_v26 = vmul.f32 %v347_v22, %v3117_v8  ;;  %v2869_v22 = vld [vmem:[%s3625_s3 + $0x9] ss:$0 sm:$0xff] }
 0x10a   : > { %v349_v30 = vadd.f32 1e-12, %v348_v26 }
 0x10c   : > { %2900 = vrsqrt.f32 %v349_v30  ;;  %vm356_vm3 = vweird.f32 %v349_v30 }
 0x112   : > { %v2901_v33 = vpop.eup %2900 }
 0x113   : > { %v351_v34 = vmul.f32 %v2901_v33, %v349_v30  ;;  %vm357_vm2 = vweird.f32 %v2901_v33  ;;  %v2871_v30 = vld [vmem:[%s3625_s3 + $0xb] ss:$0 sm:$0xff] }
 0x114   : > { %vm358_vm4 = vmor %vm356_vm3, %vm357_vm2 }
 0x115   : > { %v352_v35 = vmul.f32 %v2901_v33, %v351_v34 }
 0x117   : > { %v353_v36 = vmul.f32 0.5, %v352_v35 }
 0x119   : > { %v354_v37 = vsub.f32 1.5, %v353_v36 }
 0x11b   : > { %v355_v38 = vmul.f32 %v2901_v33, %v354_v37 }
 0x11d   : > { %v359_v40 = vsel %vm358_vm4, %v2901_v33, %v355_v38 }
 0x11e   : > { %v360_v42 = vmul.f32 %v359_v40, %v343_v11  ;;  %v2862_v11 = vld [vmem:[%s3625_s3 + $0x2] ss:$0 sm:$0xff] }
 0x120   : > { %v362_v43 = vmul.f32 %v2858_v39, %v360_v42 }
 0x122   : > { %v3176_v44 = vadd.f32 %v2859_v41, %v362_v43 }
 0x124   : > { %v365_v45 = vpack.c.bf16 %v3176_v44, %v3176_v44 }
 0x126   : > { %2338 = vmatmul.msk.bf16.vlgmr.msra.gmra.mxu0 %vm331_vm0, %v365_v45  ;;  %2347 = vmatmul.msk.bf16.vlgmr.msra.gmra.mxu1 %vm331_vm0, %v365_v45 }
 0x127   : > { %2356 = vmatmul.msk.bf16.vlgmr.msra.gmra.mxu2 %vm331_vm0, %v365_v45  ;;  %2365 = vmatmul.msk.bf16.vlgmr.msra.gmra.mxu3 %vm331_vm0, %v365_v45 }
 0x128   : > { %687 = vmatpush.bf16.msra.mxu0 %v2775_v46  ;;  %712 = vmatpush.bf16.msra.mxu1 %v2777_v47 }
 0x129   : > { %737 = vmatpush.bf16.msra.mxu2 %v2779_v48  ;;  %762 = vmatpush.bf16.msra.mxu3 %v2781_v49 }
 0x12c   : > { %688 = vmatpush.bf16.msra.mxu0 %v2774_v50  ;;  %713 = vmatpush.bf16.msra.mxu1 %v2776_v51 }
 0x12d   : > { %738 = vmatpush.bf16.msra.mxu2 %v2778_v52  ;;  %763 = vmatpush.bf16.msra.mxu3 %v2780_v53 }
 0x136   : > { %2394 = vmatmul.msk.bf16.vlgmr.msrb.gmra.mxu0 %vm331_vm0, %v365_v45  ;;  %2403 = vmatmul.msk.bf16.vlgmr.msrb.gmra.mxu1 %vm331_vm0, %v365_v45 }
 0x137   : > { %2412 = vmatmul.msk.bf16.vlgmr.msrb.gmra.mxu2 %vm331_vm0, %v365_v45  ;;  %2421 = vmatmul.msk.bf16.vlgmr.msrb.gmra.mxu3 %vm331_vm0, %v365_v45 }
 0x146   : > { %2450 = vmatmul.msk.bf16.vlgmr.msra.gmra.mxu0 %vm331_vm0, %v365_v45  ;;  %2459 = vmatmul.msk.bf16.vlgmr.msra.gmra.mxu1 %vm331_vm0, %v365_v45 }
 0x147   : > { %2468 = vmatmul.msk.bf16.vlgmr.msra.gmra.mxu2 %vm331_vm0, %v365_v45  ;;  %2477 = vmatmul.msk.bf16.vlgmr.msra.gmra.mxu3 %vm331_vm0, %v365_v45 }
 0x1a3   : > { %v422_v54 = vpop.f32.mrf.mxu0  ;;  %v447_v55 = vpop.f32.mrf.mxu1 }
 0x1a4   : > { %v423_v6 = vadd.f32 %v2860_v0, %v422_v54  ;;  %v448_v7 = vadd.f32 %v2861_v1, %v447_v55 }
 0x1aa   : > { %v472_v56 = vpop.f32.mrf.mxu2  ;;  %v497_v57 = vpop.f32.mrf.mxu3 }
 0x1ab   : > { %v424_v58 = vpop.f32.mrf.mxu0  ;;  %v449_v59 = vpop.f32.mrf.mxu1  ;;  %v473_v19 = vadd.f32 %v2862_v11, %v472_v56  ;;  %v498_v20 = vadd.f32 %v2863_v14, %v497_v57 }
 0x1b2   : > { %v474_v62 = vpop.f32.mrf.mxu2  ;;  %v499_v63 = vpop.f32.mrf.mxu3 }
 0x1b3   : > { %v556_v2 = vpop.f32.mrf.mxu0  ;;  %v581_v3 = vpop.f32.mrf.mxu1 }
 0x1b4   : > { %v557_v4 = vadd.f32 %v2864_v60, %v556_v2  ;;  %v582_v5 = vadd.f32 %v2865_v61, %v581_v3 }
 0x1b6   : > { %2478 = vmatpush.xpose.msk.msrb.mxu3 %vm769_vm5, %v557_v4  ;;  %2480 = vmatpush.xpose.msk.msrb.mxu1 %vm769_vm5, %v582_v5 }
 0x1b9   : > { %2479 = vmatmul.msk.f32.vlgmr.msrb.gmra.mxu3 %vm769_vm5, %v423_v6  ;;  %2481 = vmatmul.msk.f32.vlgmr.msrb.gmra.mxu1 %vm769_vm5, %v448_v7 }
 0x1ba   : > { %v606_v12 = vpop.f32.mrf.mxu2  ;;  %v631_v13 = vpop.f32.mrf.mxu3 }
 0x1bb   : > { %v607_v15 = vadd.f32 %v2866_v9, %v606_v12  ;;  %v632_v16 = vadd.f32 %v2867_v10, %v631_v13  ;;  %v558_v17 = vpop.f32.mrf.mxu0  ;;  %v583_v18 = vpop.f32.mrf.mxu1 }
 0x1bc   : > { %v1014_v17 = vld [vmem:[%s3627_s5] sm:$0xf] }
 0x1bd   : > { %2482 = vmatpush.xpose.msk.msrb.mxu2 %vm769_vm5, %v607_v15  ;;  %2484 = vmatpush.xpose.msk.msra.mxu3 %vm769_vm5, %v632_v16  ;;  %v1023_v18 = vsel %vm1021_vm6, %v1014_v17, 0 }
 0x1c0   : > { %2483 = vmatmul.msk.f32.vlgmr.msrb.gmra.mxu2 %vm769_vm5, %v473_v19  ;;  %v1016_v19 = vld [vmem:[%s3627_s5 + $0x8] sm:$0xf] }
 0x1c1   : > { %2485 = vmatmul.msk.f32.vlgmr.msra.gmra.mxu3 %vm769_vm5, %v498_v20  ;;  %v1061_v20 = vsel %vm1021_vm6, %v1016_v19, 0  ;;  %v2787_v19 = vld [vmem:[%s3629_s7 + $0x18] sm:$0xff] }
 0x1c2   : > { %v608_v23 = vpop.f32.mrf.mxu2  ;;  %v633_v24 = vpop.f32.mrf.mxu3 }
 0x1c3   : > { %v690_v25 = vpop.f32.mrf.mxu0  ;;  %v715_v26 = vpop.f32.mrf.mxu1  ;;  %v1017_v23 = vld [vmem:[%s3627_s5 + $0xc] sm:$0xf] }
 0x1c4   : > { %v691_v27 = vadd.f32 %v2868_v21, %v690_v25  ;;  %v716_v28 = vadd.f32 %v2869_v22, %v715_v26  ;;  %v1015_v21 = vld [vmem:[%s3627_s5 + $0x4] sm:$0xf]  ;;  %v1080_v24 = vsel %vm1021_vm6, %v1017_v23, 0 }
 0x1c5   : > { %v1042_v22 = vsel %vm1021_vm6, %v1015_v21, 0 }
 0x1c6   : > { %936 = vmatpush.msrb.mxu0 %v691_v27  ;;  %959 = vmatpush.msra.mxu1 %v716_v28 }
 0x1c8   : > { %1032 = vmatpush.bf16.msra.mxu0 %v1023_v18  ;;  %1051 = vmatpush.bf16.msrb.mxu1 %v1042_v22 }
 0x1ca   : > { %v740_v31 = vpop.f32.mrf.mxu2  ;;  %v765_v32 = vpop.f32.mrf.mxu3 }
 0x1cb   : > { %v741_v33 = vadd.f32 %v2870_v29, %v740_v31  ;;  %v766_v34 = vadd.f32 %v2871_v30, %v765_v32  ;;  %v692_v35 = vpop.f32.mrf.mxu0  ;;  %v717_v36 = vpop.f32.mrf.mxu1 }
 0x1cd   : > { %982 = vmatpush.msra.mxu2 %v741_v33  ;;  %1005 = vmatpush.msrb.mxu3 %v766_v34 }
 0x1cf   : > { %1070 = vmatpush.bf16.msrb.mxu2 %v1061_v20  ;;  %1089 = vmatpush.bf16.msra.mxu3 %v1080_v24  ;;  %v2786_v24 = vld [vmem:[%s3629_s7 + $0x10] sm:$0xff] }
 0x1d2   : > { %v742_v37 = vpop.f32.mrf.mxu2  ;;  %v767_v38 = vpop.f32.mrf.mxu3 }
 0x236   : > { %v819_v41 = vpop.f32.mrf.mxu1 }
 0x237   : > { %v877_v45 = vsel %vm769_vm5, %v819_v41, -inf }
 0x23c   : > { %v793_v39 = vpop.f32.mrf.mxu3 }
 0x23d   : > { %v874_v40 = vsel %vm769_vm5, %v793_v39, -inf }
 0x23e   : > { %875 = vmax.xlane.f32.xlu2 %v874_v40 }
 0x243   : > { %v845_v42 = vpop.f32.mrf.mxu2 }
 0x244   : > { %v880_v43 = vsel %vm769_vm5, %v845_v42, -inf  ;;  %v871_v46 = vpop.f32.mrf.mxu3 }
 0x245   : > { %881 = vmax.xlane.f32.xlu1 %v880_v43  ;;  %v883_v47 = vsel %vm769_vm5, %v871_v46, -inf }
 0x246   : > { %878 = vmax.xlane.f32.xlu2 %v877_v45 }
 0x24d   : > { %884 = vmax.xlane.f32.xlu1 %v883_v47 }
 0x2b1   : > { %v876_v48 = vpop.xlane.xlu2 %875 }
 0x2b2   : > { %v886_v49 = vsub.f32 %v793_v39, %v876_v48 }
 0x2b4   : > { %v890_v50 = vmul.f32 1.442695, %v886_v49 }
 0x2b6   : > { %2902 = vpow2.f32 %v890_v50 }
 0x2b8   : > { %v882_v51 = vpop.xlane.xlu1 %881 }
 0x2b9   : > { %v888_v52 = vsub.f32 %v845_v42, %v882_v51  ;;  %v879_v53 = vpop.xlane.xlu2 %878 }
 0x2ba   : > { %v887_v55 = vsub.f32 %v819_v41, %v879_v53 }
 0x2bb   : > { %v894_v54 = vmul.f32 1.442695, %v888_v52 }
 0x2bc   : > { %v2903_v56 = vpop.eup %2902  ;;  %v892_v58 = vmul.f32 1.442695, %v887_v55 }
 0x2bd   : > { %2904 = vpow2.f32 %v894_v54  ;;  %v898_v57 = vsel %vm769_vm5, %v2903_v56, 0.0 }
 0x2be   : > { %899 = vadd.xlane.f32.xlu2 %v898_v57  ;;  %2906 = vpow2.f32 %v892_v58  ;;  %v2783_v58 = vld [vmem:[%s3628_s6 + $0x8] sm:$0xff] }
 0x2c0   : > { %v885_v59 = vpop.xlane.xlu1 %884 }
 0x2c1   : > { %v889_v60 = vsub.f32 %v871_v46, %v885_v59  ;;  %v2872_v46 = vld [vmem:[%s3624_s2] ss:$0 sm:$0xff] }
 0x2c3   : > { %v2905_v61 = vpop.eup %2904  ;;  %v896_v62 = vmul.f32 1.442695, %v889_v60 }
 0x2c4   : > { %v904_v63 = vsel %vm769_vm5, %v2905_v61, 0.0  ;;  %v2907_v0 = vpop.eup %2906 }
 0x2c5   : > { %2908 = vpow2.f32 %v896_v62  ;;  %905 = vadd.xlane.f32.xlu0 %v904_v63  ;;  %v901_v2 = vsel %vm769_vm5, %v2907_v0, 0.0 }
 0x2cb   : > { %v2909_v1 = vpop.eup %2908 }
 0x2cc   : > { %v907_v3 = vsel %vm769_vm5, %v2909_v1, 0.0 }
 0x2cd   : > { %902 = vadd.xlane.f32.xlu0 %v901_v2  ;;  %908 = vadd.xlane.f32.xlu1 %v907_v3 }
 0x331   : > { %v900_v4 = vpop.xlane.xlu2 %899 }
 0x332   : > { %2910 = vrcp.f32 %v900_v4  ;;  %v2873_v4 = vld [vmem:[%s3624_s2 + $0x1] ss:$0 sm:$0xff] }
 0x338   : > { %v2911_v5 = vpop.eup %2910  ;;  %v906_v6 = vpop.xlane.xlu0 %905 }
 0x339   : > { %v914_v7 = vmul.f32 %v2911_v5, %v2903_v56  ;;  %2912 = vrcp.f32 %v906_v6  ;;  %v2874_v6 = vld [vmem:[%s3624_s2 + $0x2] ss:$0 sm:$0xff] }
 0x33b   : > { %2486 = vmatmul.msk.f32.vlgmr.msrb.gmra.mxu0 %vm769_vm5, %v914_v7 }
 0x33c   : > { %1162 = vmatpush.bf16.msrb.mxu0 %v2783_v58 }
 0x33f   : > { %v2913_v9 = vpop.eup %2912 }
 0x340   : > { %v916_v10 = vmul.f32 %v2913_v9, %v2905_v61  ;;  %v903_v11 = vpop.xlane.xlu0 %902  ;;  %v909_v12 = vpop.xlane.xlu1 %908 }
 0x341   : > { %2914 = vrcp.f32 %v903_v11 }
 0x342   : > { %2916 = vrcp.f32 %v909_v12  ;;  %2488 = vmatmul.msk.f32.vlgmr.msra.gmra.mxu2 %vm769_vm5, %v916_v10  ;;  %v2875_v12 = vld [vmem:[%s3624_s2 + $0x3] ss:$0 sm:$0xff] }
 0x347   : > { %v2915_v13 = vpop.eup %2914 }
 0x348   : > { %v2917_v14 = vpop.eup %2916  ;;  %v915_v15 = vmul.f32 %v2915_v13, %v2907_v0 }
 0x349   : > { %v917_v16 = vmul.f32 %v2917_v14, %v2909_v1 }
 0x34a   : > { %2487 = vmatmul.msk.f32.vlgmr.msra.gmra.mxu1 %vm769_vm5, %v915_v15 }
 0x34b   : > { %2489 = vmatmul.msk.f32.vlgmr.msrb.gmra.mxu3 %vm769_vm5, %v917_v16  ;;  %1256 = vmatpush.bf16.msra.mxu1 %v2787_v19  ;;  %v2801_v19 = vld [vmem:[%s3626_s4 + $0x128] sm:$0xff] }
 0x34f   : > { %1257 = vmatpush.bf16.msra.mxu1 %v2786_v24 }
 0x3b8   : > { %v938_v25 = vpop.f32.mrf.mxu0 }
 0x3b9   : > { %v1010_v26 = vpack.c.bf16 %v938_v25, %v938_v25 }
 0x3bb   : > { %2490 = vmatmul.msk.bf16.vlgmr.msra.gmra.mxu0 %vm769_vm5, %v1010_v26 }
 0x3c5   : > { %v984_v27 = vpop.f32.mrf.mxu2 }
 0x3c6   : > { %v1012_v28 = vpack.c.bf16 %v984_v27, %v984_v27 }
 0x3c7   : > { %v961_v29 = vpop.f32.mrf.mxu1 }
 0x3c8   : > { %v1011_v30 = vpack.c.bf16 %v961_v29, %v961_v29  ;;  %2492 = vmatmul.msk.bf16.vlgmr.msrb.gmra.mxu2 %vm769_vm5, %v1012_v28  ;;  %v2785_v29 = vld [vmem:[%s3629_s7 + $0x8] sm:$0xff] }
 0x3c9   : > { %1258 = vmatpush.bf16.msra.mxu1 %v2785_v29 }
 0x3ca   : > { %2491 = vmatmul.msk.bf16.vlgmr.msrb.gmra.mxu1 %vm769_vm5, %v1011_v30 }
 0x3ce   : > { %v1007_v31 = vpop.f32.mrf.mxu3 }
 0x3cf   : > { %v1013_v32 = vpack.c.bf16 %v1007_v31, %v1007_v31 }
 0x3d1   : > { %2493 = vmatmul.msk.bf16.vlgmr.msra.gmra.mxu3 %vm769_vm5, %v1013_v32 }
 0x438   : > { %v1034_v33 = vpop.f32.mrf.mxu0 }
 0x439   : > { %v1095_v39 = vsel %vm331_vm0, %v1034_v33, 0.0  ;;  %v2784_v33 = vld [vmem:[%s3629_s7] sm:$0xff] }
 0x43a   : > { %1259 = vmatpush.bf16.msra.mxu1 %v2784_v33  ;;  %v2877_v33 = vld [vmem:[%s3624_s2 + $0x5] ss:$0 sm:$0xff] }
 0x440   : > { %v1036_v34 = vpop.f32.mrf.mxu0 }
 0x447   : > { %v1053_v35 = vpop.f32.mrf.mxu1 }
 0x448   : > { %v1096_v37 = vsel %vm331_vm0, %v1053_v35, 0.0 }
 0x449   : > { %v1097_v41 = vadd.f32 %v1096_v37, %v1095_v39 }
 0x44b   : > { %v1072_v36 = vpop.f32.mrf.mxu2 }
 0x44c   : > { %v1098_v40 = vsel %vm331_vm0, %v1072_v36, 0.0 }
 0x44d   : > { %v1099_v43 = vadd.f32 %v1098_v40, %v1097_v41 }
 0x44f   : > { %v1055_v38 = vpop.f32.mrf.mxu1 }
 0x453   : > { %v1074_v42 = vpop.f32.mrf.mxu2 }
 0x454   : > { %v1091_v45 = vpop.f32.mrf.mxu3 }
 0x455   : > { %v1100_v47 = vsel %vm331_vm0, %v1091_v45, 0.0 }
 0x456   : > { %v1101_v48 = vadd.f32 %v1100_v47, %v1099_v43 }
 0x458   : > { %v1104_v49 = vadd.f32 %v2872_v46, %v1101_v48 }
 0x45a   : > { %v1105_v50 = vadd.f32 %v1104_v49, %v3176_v44  ;;  %v2782_v44 = vld [vmem:[%s3628_s6] sm:$0xff] }
 0x45b   : > { %1163 = vmatpush.bf16.msrb.mxu0 %v2782_v44 }
 0x45c   : > { %v1093_v51 = vpop.f32.mrf.mxu3  ;;  %v1108_v52 = vsel %vm331_vm0, %v1105_v50, 0.0 }
 0x45d   : > { %1109 = vadd.xlane.f32.xlu1 %v1108_v52 }
 0x4d0   : > { %v1110_v53 = vpop.xlane.xlu1 %1109 }
 0x4d1   : > { %v1111_v54 = vmul.f32 %v1110_v53, %v3117_v8 }
 0x4d3   : > { %v1112_v55 = vsub.f32 %v1105_v50, %v1111_v54 }
 0x4d5   : > { %v1113_v56 = vmul.f32 %v1112_v55, %v1112_v55 }
 0x4d7   : > { %v1114_v57 = vsel %vm331_vm0, %v1113_v56, 0.0 }
 0x4d8   : > { %1115 = vadd.xlane.f32.xlu2 %v1114_v57 }
 0x54b   : > { %v1116_v59 = vpop.xlane.xlu2 %1115 }
 0x54c   : > { %v1117_v60 = vmul.f32 %v1116_v59, %v3117_v8 }
 0x54e   : > { %v1118_v61 = vadd.f32 1e-12, %v1117_v60  ;;  %v2876_v60 = vld [vmem:[%s3624_s2 + $0x4] ss:$0 sm:$0xff] }
 0x550   : > { %2918 = vrsqrt.f32 %v1118_v61  ;;  %vm1125_vm8 = vweird.f32 %v1118_v61 }
 0x556   : > { %v2919_v62 = vpop.eup %2918 }
 0x557   : > { %v1120_v63 = vmul.f32 %v2919_v62, %v1118_v61  ;;  %vm1126_vm7 = vweird.f32 %v2919_v62 }
 0x558   : > { %vm1127_vm9 = vmor %vm1125_vm8, %vm1126_vm7 }
 0x559   : > { %v1121_v0 = vmul.f32 %v2919_v62, %v1120_v63 }
 0x55b   : > { %v1122_v1 = vmul.f32 0.5, %v1121_v0 }
 0x55d   : > { %v1123_v2 = vsub.f32 1.5, %v1122_v1 }
 0x55f   : > { %v1124_v3 = vmul.f32 %v2919_v62, %v1123_v2 }
 0x561   : > { %v1128_v5 = vsel %vm1127_vm9, %v2919_v62, %v1124_v3 }
 0x562   : > { %v1129_v7 = vmul.f32 %v1128_v5, %v1112_v55 }
 0x564   : > { %v1131_v9 = vmul.f32 %v2873_v4, %v1129_v7  ;;  %v2789_v7 = vld [vmem:[%s3626_s4 + $0xc8] sm:$0xff] }
 0x565   : > { %1350 = vmatpush.bf16.msra.mxu2 %v2789_v7 }
 0x566   : > { %v3316_v10 = vadd.f32 %v2874_v6, %v1131_v9  ;;  %v2791_v9 = vld [vmem:[%s3626_s4 + $0xd8] sm:$0xff] }
 0x567   : > { %1375 = vmatpush.bf16.msrb.mxu3 %v2791_v9 }
 0x568   : > { %v1134_v11 = vpack.c.bf16 %v3316_v10, %v3316_v10 }
 0x56a   : > { %2502 = vmatmul.msk.bf16.vlgmr.msrb.gmra.mxu0 %vm331_vm0, %v1134_v11  ;;  %v2795_v11 = vld [vmem:[%s3626_s4 + $0xf8] sm:$0xff] }
 0x56b   : > { %1425 = vmatpush.bf16.msrb.mxu1 %v2795_v11 }
 0x5e7   : > { %v1165_v13 = vpop.f32.mrf.mxu0 }
 0x5e8   : > { %v1166_v14 = vadd.f32 %v2875_v12, %v1165_v13  ;;  %v2788_v12 = vld [vmem:[%s3626_s4 + $0xc0] sm:$0xff]  ;;  %v2790_v13 = vld [vmem:[%s3626_s4 + $0xd0] sm:$0xff] }
 0x5e9   : > { %1351 = vmatpush.bf16.msra.mxu2 %v2788_v12  ;;  %1376 = vmatpush.bf16.msrb.mxu3 %v2790_v13  ;;  %v2887_v13 = vld [vmem:[%s3625_s3 + $0x16] ss:$0 sm:$0xff] }
 0x5ea   : > { %v1170_v15 = vmul.f32 0.70710677, %v1166_v14  ;;  %v1169_v57 = vmul.f32 0.5, %v1166_v14  ;;  %v2792_v14 = vld [vmem:[%s3626_s4 + $0xe0] sm:$0xff] }
 0x5ec   : > { %v1171_v16 = vmul.f32 %v1170_v15, %v1170_v15 }
 0x5ee   : > { %v1172_v17 = vmin.f32 %v1171_v16, 16.0 }
 0x5ef   : > { %v1167_v18 = vpop.f32.mrf.mxu0 }
 0x5f0   : > { %v1173_v20 = vmul.f32 2.1237322e-06, %v1172_v17  ;;  %v1184_v21 = vmul.f32 3.8918573e-05, %v1172_v17  ;;  %v2799_v18 = vld [vmem:[%s3626_s4 + $0x118] sm:$0xff] }
 0x5f1   : > { %1509 = vmatpush.bf16.msra.mxu3 %v2799_v18 }
 0x5f2   : > { %v1174_v22 = vadd.f32 0.00028619796, %v1173_v20  ;;  %v1185_v23 = vadd.f32 0.001143296, %v1184_v21  ;;  %v2803_v21 = vld [vmem:[%s3626_s4 + $0x138] sm:$0xff] }
 0x5f4   : > { %v1175_v25 = vmul.f32 %v1174_v22, %v1172_v17  ;;  %v1186_v26 = vmul.f32 %v1185_v23, %v1172_v17  ;;  %v2796_v22 = vld [vmem:[%s3626_s4 + $0x100] sm:$0xff]  ;;  %v2798_v23 = vld [vmem:[%s3626_s4 + $0x110] sm:$0xff] }
 0x5f5   : > { %1510 = vmatpush.bf16.msra.mxu3 %v2798_v23  ;;  %v2889_v23 = vld [vmem:[%s3625_s3 + $0x14] ss:$0 sm:$0xff] }
 0x5f6   : > { %v1187_v27 = vadd.f32 0.014752088, %v1186_v26  ;;  %v1176_v28 = vadd.f32 0.0036580483, %v1175_v25  ;;  %v2800_v25 = vld [vmem:[%s3626_s4 + $0x120] sm:$0xff]  ;;  %v2802_v26 = vld [vmem:[%s3626_s4 + $0x130] sm:$0xff] }
 0x5f8   : > { %v1188_v30 = vmul.f32 %v1187_v27, %v1172_v17  ;;  %v1177_v32 = vmul.f32 %v1176_v28, %v1172_v17 }
 0x5fa   : > { %v1189_v31 = vadd.f32 0.112945676, %v1188_v30  ;;  %v1178_v36 = vadd.f32 0.05243302, %v1177_v32 }
 0x5fc   : > { %v1190_v34 = vmul.f32 %v1189_v31, %v1172_v17  ;;  %v1179_v39 = vmul.f32 %v1178_v36, %v1172_v17 }
 0x5fe   : > { %v1191_v35 = vadd.f32 0.4994258, %v1190_v34  ;;  %v1180_v40 = vadd.f32 0.18741608, %v1179_v39 }
 0x600   : > { %v1192_v37 = vmul.f32 %v1191_v35, %v1172_v17  ;;  %v1181_v42 = vmul.f32 %v1180_v40, %v1172_v17  ;;  %v2797_v17 = vld [vmem:[%s3626_s4 + $0x108] sm:$0xff]  ;;  %v2878_v35 = vld [vmem:[%s3624_s2 + $0x6] ss:$0 sm:$0xff] }
 0x601   : > { %1484 = vmatpush.bf16.msrb.mxu2 %v2797_v17  ;;  %v2805_v40 = vld [vmem:[%s3626_s4 + $0x148] sm:$0xff] }
 0x602   : > { %v1193_v38 = vadd.f32 1.0, %v1192_v37  ;;  %v1182_v47 = vadd.f32 1.1283791, %v1181_v42  ;;  %v2809_v42 = vld [vmem:[%s3626_s4 + $0x168] sm:$0xff] }
 0x604   : > { %2920 = vrcp.f32 %v1193_v38  ;;  %v1205_v46 = vand.u32 2147483648, %v1193_v38  ;;  %v1203_v49 = vand.u32 2147483647, %v1193_v38  ;;  %vm1199_vm11 = vweird.f32 %v1193_v38 }
 0x605   : > { %v1183_v52 = vmul.f32 %v1182_v47, %v1170_v15  ;;  %v2794_v15 = vld [vmem:[%s3626_s4 + $0xf0] sm:$0xff]  ;;  %1485 = vmatpush.bf16.msrb.mxu2 %v2796_v22  ;;  %v2808_v47 = vld [vmem:[%s3626_s4 + $0x160] sm:$0xff] }
 0x606   : > { %v1206_v51 = vor.u32 1.1754944e-38, %v1205_v46  ;;  %vm1204_vm13 = vcmp.eq.f32.partialorder %v1203_v49, 8.507059e+37  ;;  %1426 = vmatpush.bf16.msrb.mxu1 %v2794_v15  ;;  %v2806_v46 = vld [vmem:[%s3626_s4 + $0x150] sm:$0xff]  ;;  %v2879_v15 = vld [vmem:[%s3625_s3 + $0xe] ss:$0 sm:$0xff] }
 0x60a   : > { %v2921_v41 = vpop.eup %2920 }
 0x60b   : > { %v1195_v43 = vmul.f32 %v2921_v41, %v1193_v38  ;;  %vm1200_vm10 = vweird.f32 %v2921_v41 }
 0x60c   : > { %vm1201_vm12 = vmor %vm1199_vm11, %vm1200_vm10 }
 0x60d   : > { %v1196_v45 = vsub.f32 1.0, %v1195_v43  ;;  %v2811_v43 = vld [vmem:[%s3626_s4 + $0x178] sm:$0xff] }
 0x60f   : > { %v1197_v48 = vmul.f32 %v2921_v41, %v1196_v45  ;;  %v2804_v45 = vld [vmem:[%s3626_s4 + $0x140] sm:$0xff] }
 0x611   : > { %v1198_v50 = vadd.f32 %v2921_v41, %v1197_v48  ;;  %v2810_v48 = vld [vmem:[%s3626_s4 + $0x170] sm:$0xff] }
 0x613   : > { %v1202_v53 = vsel %vm1201_vm12, %v2921_v41, %v1198_v50  ;;  %v2807_v41 = vld [vmem:[%s3626_s4 + $0x158] sm:$0xff] }
 0x614   : > { %v1207_v54 = vsel %vm1204_vm13, %v1206_v51, %v1202_v53  ;;  %vm2255_vm13 = vcmask 253952  }
 0x615   : > { %v1208_v55 = vmul.f32 %v1207_v54, %v1183_v52 }
 0x617   : > { %v2503_v56 = vclamps-f32 %v1208_v55, 1.0 }
 0x619   : > { %v1211_v58 = vadd.f32 1.0, %v2503_v56 }
 0x61b   : > { %v1212_v44 = vmul.f32 %v1211_v58, %v1169_v57 }
 0x61d   : > { %v1213_v59 = vpack.c.bf16 %v1212_v44, %v1212_v44  ;;  %v2885_v44 = vld [vmem:[%s3625_s3 + $0x10] ss:$0 sm:$0xff] }
 0x61f   : > { %2520 = vmatmul.msk.bf16.vlgmr.msra.gmra.mxu1 %vm1248_vm14, %v1213_v59  ;;  %v2886_v59 = vld [vmem:[%s3625_s3 + $0x11] ss:$0 sm:$0xff] }
 0x620   : > { %1559 = vmatpush.bf16.msra.mxu1 %v2803_v21 }
 0x624   : > { %1560 = vmatpush.bf16.msra.mxu1 %v2802_v26 }
 0x69c   : > { %v1261_v61 = vpop.f32.mrf.mxu1 }
 0x69d   : > { %v1262_v62 = vadd.f32 %v2876_v60, %v1261_v61  ;;  %v2883_v60 = vld [vmem:[%s3625_s3 + $0x12] ss:$0 sm:$0xff]  ;;  %v2884_v61 = vld [vmem:[%s3625_s3 + $0x13] ss:$0 sm:$0xff] }
 0x69f   : > { %v1265_v63 = vadd.f32 %v1262_v62, %v3316_v10  ;;  %v2793_v10 = vld [vmem:[%s3626_s4 + $0xe8] sm:$0xff] }
 0x6a0   : > { %1400 = vmatpush.bf16.msra.mxu0 %v2793_v10  ;;  %v2881_v62 = vld [vmem:[%s3625_s3 + $0xc] ss:$0 sm:$0xff] }
 0x6a1   : > { %v1268_v0 = vsel %vm331_vm0, %v1265_v63, 0.0 }
 0x6a2   : > { %1269 = vadd.xlane.f32.xlu0 %v1268_v0 }
 0x6a4   : > { %v1263_v1 = vpop.f32.mrf.mxu1  ;;  %1401 = vmatpush.bf16.msra.mxu0 %v2792_v14  ;;  %v2888_v14 = vld [vmem:[%s3625_s3 + $0x17] ss:$0 sm:$0xff] }
 0x6a8   : > { %1534 = vmatpush.bf16.msrb.mxu0 %v2801_v19 }
 0x6ac   : > { %1535 = vmatpush.bf16.msrb.mxu0 %v2800_v25 }
 0x715   : > { %v1270_v2 = vpop.xlane.xlu0 %1269 }
 0x716   : > { %v1271_v3 = vmul.f32 %v1270_v2, %v3117_v8 }
 0x718   : > { %v1272_v4 = vsub.f32 %v1265_v63, %v1271_v3  ;;  %v2882_v63 = vld [vmem:[%s3625_s3 + $0xd] ss:$0 sm:$0xff] }
 0x71a   : > { %v1273_v5 = vmul.f32 %v1272_v4, %v1272_v4 }
 0x71c   : > { %v1274_v6 = vsel %vm331_vm0, %v1273_v5, 0.0 }
 0x71d   : > { %1275 = vadd.xlane.f32.xlu1 %v1274_v6 }
 0x790   : > { %v1276_v16 = vpop.xlane.xlu1 %1275 }
 0x791   : > { %v1277_v20 = vmul.f32 %v1276_v16, %v3117_v8  ;;  %v2880_v16 = vld [vmem:[%s3625_s3 + $0xf] ss:$0 sm:$0xff] }
 0x793   : > { %v1278_v24 = vadd.f32 1e-12, %v1277_v20 }
 0x795   : > { %2922 = vrsqrt.f32 %v1278_v24  ;;  %vm1285_vm1 = vweird.f32 %v1278_v24 }
 0x79b   : > { %v2923_v27 = vpop.eup %2922 }
 0x79c   : > { %v1280_v28 = vmul.f32 %v2923_v27, %v1278_v24  ;;  %vm1286_vm15 = vweird.f32 %v2923_v27  ;;  %v2890_v24 = vld [vmem:[%s3625_s3 + $0x15] ss:$0 sm:$0xff] }
 0x79d   : > { %vm1287_vm2 = vmor %vm1285_vm1, %vm1286_vm15 }
 0x79e   : > { %v1281_v29 = vmul.f32 %v2923_v27, %v1280_v28 }
 0x7a0   : > { %v1282_v30 = vmul.f32 0.5, %v1281_v29 }
 0x7a2   : > { %v1283_v31 = vsub.f32 1.5, %v1282_v30 }
 0x7a4   : > { %v1284_v32 = vmul.f32 %v2923_v27, %v1283_v31 }
 0x7a6   : > { %v1288_v34 = vsel %vm1287_vm2, %v2923_v27, %v1284_v32 }
 0x7a7   : > { %v1289_v36 = vmul.f32 %v1288_v34, %v1272_v4 }
 0x7a9   : > { %v1291_v37 = vmul.f32 %v2877_v33, %v1289_v36 }
 0x7ab   : > { %v3399_v38 = vadd.f32 %v2878_v35, %v1291_v37 }
 0x7ad   : > { %v1294_v39 = vpack.c.bf16 %v3399_v38, %v3399_v38 }
 0x7af   : > { %2549 = vmatmul.msk.bf16.vlgmr.msra.gmra.mxu2 %vm331_vm0, %v1294_v39  ;;  %2558 = vmatmul.msk.bf16.vlgmr.msrb.gmra.mxu3 %vm331_vm0, %v1294_v39 }
 0x7b0   : > { %2567 = vmatmul.msk.bf16.vlgmr.msra.gmra.mxu0 %vm331_vm0, %v1294_v39  ;;  %2576 = vmatmul.msk.bf16.vlgmr.msrb.gmra.mxu1 %vm331_vm0, %v1294_v39 }
 0x7b1   : > { %1618 = vmatpush.bf16.msra.mxu2 %v2805_v40  ;;  %1643 = vmatpush.bf16.msrb.mxu3 %v2807_v41 }
 0x7b2   : > { %1668 = vmatpush.bf16.msra.mxu0 %v2809_v42  ;;  %1693 = vmatpush.bf16.msrb.mxu1 %v2811_v43 }
 0x7b5   : > { %1619 = vmatpush.bf16.msra.mxu2 %v2804_v45  ;;  %1644 = vmatpush.bf16.msrb.mxu3 %v2806_v46 }
 0x7b6   : > { %1669 = vmatpush.bf16.msra.mxu0 %v2808_v47  ;;  %1694 = vmatpush.bf16.msrb.mxu1 %v2810_v48 }
 0x7bf   : > { %2605 = vmatmul.msk.bf16.vlgmr.msrb.gmra.mxu2 %vm331_vm0, %v1294_v39  ;;  %2614 = vmatmul.msk.bf16.vlgmr.msra.gmra.mxu3 %vm331_vm0, %v1294_v39 }
 0x7c0   : > { %2623 = vmatmul.msk.bf16.vlgmr.msrb.gmra.mxu0 %vm331_vm0, %v1294_v39  ;;  %2632 = vmatmul.msk.bf16.vlgmr.msra.gmra.mxu1 %vm331_vm0, %v1294_v39 }
 0x7cf   : > { %2661 = vmatmul.msk.bf16.vlgmr.msra.gmra.mxu2 %vm331_vm0, %v1294_v39  ;;  %2670 = vmatmul.msk.bf16.vlgmr.msrb.gmra.mxu3 %vm331_vm0, %v1294_v39 }
 0x7d0   : > { %2679 = vmatmul.msk.bf16.vlgmr.msra.gmra.mxu0 %vm331_vm0, %v1294_v39  ;;  %2688 = vmatmul.msk.bf16.vlgmr.msrb.gmra.mxu1 %vm331_vm0, %v1294_v39 }
 0x82d   : > { %v1403_v49 = vpop.f32.mrf.mxu0  ;;  %v1428_v50 = vpop.f32.mrf.mxu1 }
 0x82e   : > { %v1404_v21 = vadd.f32 %v2879_v15, %v1403_v49  ;;  %v1429_v22 = vadd.f32 %v2880_v16, %v1428_v50 }
 0x832   : > { %v1353_v51 = vpop.f32.mrf.mxu2  ;;  %v1378_v52 = vpop.f32.mrf.mxu3 }
 0x833   : > { %v1354_v9 = vadd.f32 %v2881_v62, %v1353_v51  ;;  %v1379_v10 = vadd.f32 %v2882_v63, %v1378_v52 }
 0x835   : > { %v1405_v53 = vpop.f32.mrf.mxu0  ;;  %v1430_v54 = vpop.f32.mrf.mxu1 }
 0x83a   : > { %v1355_v55 = vpop.f32.mrf.mxu2  ;;  %v1380_v56 = vpop.f32.mrf.mxu3 }
 0x83d   : > { %v1537_v57 = vpop.f32.mrf.mxu0  ;;  %v1562_v58 = vpop.f32.mrf.mxu1 }
 0x83e   : > { %v1538_v4 = vadd.f32 %v2883_v60, %v1537_v57  ;;  %v1563_v5 = vadd.f32 %v2884_v61, %v1562_v58 }
 0x842   : > { %v1487_v0 = vpop.f32.mrf.mxu2  ;;  %v1512_v1 = vpop.f32.mrf.mxu3 }
 0x843   : > { %v1488_v2 = vadd.f32 %v2885_v44, %v1487_v0  ;;  %v1513_v3 = vadd.f32 %v2886_v59, %v1512_v1 }
 0x845   : > { %v1539_v6 = vpop.f32.mrf.mxu0  ;;  %v1564_v7 = vpop.f32.mrf.mxu1  ;;  %2689 = vmatpush.xpose.msk.msrb.mxu2 %vm769_vm5, %v1488_v2  ;;  %2691 = vmatpush.xpose.msk.msra.mxu3 %vm769_vm5, %v1513_v3 }
 0x848   : > { %2690 = vmatmul.msk.f32.vlgmr.msrb.gmra.mxu2 %vm769_vm5, %v1354_v9  ;;  %2692 = vmatmul.msk.f32.vlgmr.msra.gmra.mxu3 %vm769_vm5, %v1379_v10 }
 0x849   : > { %2693 = vmatpush.xpose.msk.msra.mxu2 %vm769_vm5, %v1538_v4  ;;  %2695 = vmatpush.xpose.msk.msrb.mxu3 %vm769_vm5, %v1563_v5 }
 0x84a   : > { %v1489_v11 = vpop.f32.mrf.mxu2  ;;  %v1514_v12 = vpop.f32.mrf.mxu3 }
 0x84b   : > { %v2701_v11 = vld [vmem:[%s3627_s5 + $0x10] sm:$0xf] }
 0x84c   : > { %v1953_v12 = vsel %vm1021_vm6, %v2701_v11, 0 }
 0x84d   : > { %v1671_v17 = vpop.f32.mrf.mxu0  ;;  %v1696_v18 = vpop.f32.mrf.mxu1 }
 0x84e   : > { %v1672_v19 = vadd.f32 %v2887_v13, %v1671_v17  ;;  %v1697_v20 = vadd.f32 %v2888_v14, %v1696_v18  ;;  %v2703_v13 = vld [vmem:[%s3627_s5 + $0x18] sm:$0xf]  ;;  %v2704_v14 = vld [vmem:[%s3627_s5 + $0x1c] sm:$0xf]  ;;  %v2702_v17 = vld [vmem:[%s3627_s5 + $0x14] sm:$0xf] }
 0x84f   : > { %v1991_v15 = vsel %vm1021_vm6, %v2703_v13, 0  ;;  %v2010_v16 = vsel %vm1021_vm6, %v2704_v14, 0  ;;  %v1972_v18 = vsel %vm1021_vm6, %v2702_v17, 0  ;;  %v2817_v13 = vld [vmem:[%s3629_s7 + $0x38] sm:$0xff] }
 0x850   : > { %1912 = vmatpush.msrb.mxu2 %v1672_v19  ;;  %1935 = vmatpush.msra.mxu3 %v1697_v20 }
 0x851   : > { %2694 = vmatmul.msk.f32.vlgmr.msra.gmra.mxu2 %vm769_vm5, %v1404_v21  ;;  %2696 = vmatmul.msk.f32.vlgmr.msrb.gmra.mxu3 %vm769_vm5, %v1429_v22 }
 0x852   : > { %v1621_v25 = vpop.f32.mrf.mxu2  ;;  %v1646_v26 = vpop.f32.mrf.mxu3  ;;  %2000 = vmatpush.bf16.msra.mxu2 %v1991_v15  ;;  %2019 = vmatpush.bf16.msrb.mxu3 %v2010_v16 }
 0x853   : > { %v1622_v27 = vadd.f32 %v2889_v23, %v1621_v25  ;;  %v1647_v28 = vadd.f32 %v2890_v24, %v1646_v26 }
 0x855   : > { %v1673_v29 = vpop.f32.mrf.mxu0  ;;  %v1698_v30 = vpop.f32.mrf.mxu1  ;;  %1866 = vmatpush.msrb.mxu0 %v1622_v27  ;;  %1889 = vmatpush.msra.mxu1 %v1647_v28 }
 0x857   : > { %1962 = vmatpush.bf16.msra.mxu0 %v1953_v12  ;;  %1981 = vmatpush.bf16.msrb.mxu1 %v1972_v18  ;;  %v2816_v18 = vld [vmem:[%s3629_s7 + $0x30] sm:$0xff] }
 0x85a   : > { %v1623_v31 = vpop.f32.mrf.mxu2  ;;  %v1648_v32 = vpop.f32.mrf.mxu3 }
 0x8cb   : > { %v1723_v33 = vpop.f32.mrf.mxu2  ;;  %v1749_v34 = vpop.f32.mrf.mxu3 }
 0x8cc   : > { %v1804_v35 = vsel %vm769_vm5, %v1723_v33, -inf  ;;  %v1807_v41 = vsel %vm769_vm5, %v1749_v34, -inf }
 0x8cd   : > { %1805 = vmax.xlane.f32.xlu1 %v1804_v35 }
 0x8d4   : > { %v1775_v36 = vpop.f32.mrf.mxu2  ;;  %v1801_v37 = vpop.f32.mrf.mxu3 }
 0x8d5   : > { %v1810_v39 = vsel %vm769_vm5, %v1775_v36, -inf  ;;  %v1813_v40 = vsel %vm769_vm5, %v1801_v37, -inf }
 0x8d6   : > { %1811 = vmax.xlane.f32.xlu2 %v1810_v39  ;;  %1814 = vmax.xlane.f32.xlu0 %v1813_v40 }
 0x8de   : > { %1808 = vmax.xlane.f32.xlu2 %v1807_v41 }
 0x940   : > { %v1806_v42 = vpop.xlane.xlu1 %1805 }
 0x941   : > { %v1816_v43 = vsub.f32 %v1723_v33, %v1806_v42 }
 0x943   : > { %v1820_v45 = vmul.f32 1.442695, %v1816_v43 }
 0x945   : > { %2924 = vpow2.f32 %v1820_v45 }
 0x949   : > { %v1812_v46 = vpop.xlane.xlu2 %1811  ;;  %v1815_v47 = vpop.xlane.xlu0 %1814 }
 0x94a   : > { %v1818_v48 = vsub.f32 %v1775_v36, %v1812_v46  ;;  %v1819_v49 = vsub.f32 %v1801_v37, %v1815_v47  ;;  %v2891_v37 = vld [vmem:[%s3624_s2 + $0x8] ss:$0 sm:$0xff] }
 0x94b   : > { %v2925_v50 = vpop.eup %2924 }
 0x94c   : > { %v1824_v51 = vmul.f32 1.442695, %v1818_v48  ;;  %v1826_v52 = vmul.f32 1.442695, %v1819_v49  ;;  %v1828_v53 = vsel %vm769_vm5, %v2925_v50, 0.0 }
 0x94d   : > { %1829 = vadd.xlane.f32.xlu2 %v1828_v53  ;;  %v2813_v53 = vld [vmem:[%s3628_s6 + $0x18] sm:$0xff] }
 0x94e   : > { %2926 = vpow2.f32 %v1824_v51 }
 0x94f   : > { %2928 = vpow2.f32 %v1826_v52 }
 0x951   : > { %v1809_v54 = vpop.xlane.xlu2 %1808 }
 0x952   : > { %v1817_v55 = vsub.f32 %v1749_v34, %v1809_v54 }
 0x954   : > { %v2927_v56 = vpop.eup %2926  ;;  %v1822_v57 = vmul.f32 1.442695, %v1817_v55 }
 0x955   : > { %v2929_v58 = vpop.eup %2928  ;;  %v1834_v44 = vsel %vm769_vm5, %v2927_v56, 0.0 }
 0x956   : > { %2930 = vpow2.f32 %v1822_v57  ;;  %1835 = vadd.xlane.f32.xlu0 %v1834_v44  ;;  %v1837_v59 = vsel %vm769_vm5, %v2929_v58, 0.0 }
 0x957   : > { %1838 = vadd.xlane.f32.xlu1 %v1837_v59 }
 0x95c   : > { %v2931_v60 = vpop.eup %2930 }
 0x95d   : > { %v1831_v61 = vsel %vm769_vm5, %v2931_v60, 0.0 }
 0x95e   : > { %1832 = vadd.xlane.f32.xlu0 %v1831_v61 }
 0x9c0   : > { %v1830_v62 = vpop.xlane.xlu2 %1829 }
 0x9c1   : > { %2932 = vrcp.f32 %v1830_v62  ;;  %v2892_v62 = vld [vmem:[%s3624_s2 + $0x9] ss:$0 sm:$0xff] }
 0x9c7   : > { %v2933_v63 = vpop.eup %2932 }
 0x9c8   : > { %v1844_v0 = vmul.f32 %v2933_v63, %v2925_v50 }
 0x9c9   : > { %v1836_v1 = vpop.xlane.xlu0 %1835 }
 0x9ca   : > { %v1839_v2 = vpop.xlane.xlu1 %1838  ;;  %2934 = vrcp.f32 %v1836_v1  ;;  %2697 = vmatmul.msk.f32.vlgmr.msrb.gmra.mxu0 %vm769_vm5, %v1844_v0  ;;  %v2893_v0 = vld [vmem:[%s3624_s2 + $0xa] ss:$0 sm:$0xff] }
 0x9cb   : > { %2936 = vrcp.f32 %v1839_v2  ;;  %2094 = vmatpush.bf16.msrb.mxu0 %v2813_v53 }
 0x9d0   : > { %v2935_v3 = vpop.eup %2934 }
 0x9d1   : > { %v2937_v4 = vpop.eup %2936  ;;  %v1846_v5 = vmul.f32 %v2935_v3, %v2927_v56  ;;  %v1833_v6 = vpop.xlane.xlu0 %1832 }
 0x9d2   : > { %v1847_v7 = vmul.f32 %v2937_v4, %v2929_v58  ;;  %2938 = vrcp.f32 %v1833_v6 }
 0x9d3   : > { %2699 = vmatmul.msk.f32.vlgmr.msrb.gmra.mxu2 %vm769_vm5, %v1846_v5  ;;  %v2894_v5 = vld [vmem:[%s3624_s2 + $0xb] ss:$0 sm:$0xff] }
 0x9d4   : > { %2700 = vmatmul.msk.f32.vlgmr.msra.gmra.mxu3 %vm769_vm5, %v1847_v7 }
 0x9d8   : > { %v2939_v9 = vpop.eup %2938 }
 0x9d9   : > { %v1845_v10 = vmul.f32 %v2939_v9, %v2931_v60 }
 0x9db   : > { %2698 = vmatmul.msk.f32.vlgmr.msra.gmra.mxu1 %vm769_vm5, %v1845_v10 }
 0x9dc   : > { %2188 = vmatpush.bf16.msra.mxu1 %v2817_v13 }
 0x9e0   : > { %2189 = vmatpush.bf16.msra.mxu1 %v2816_v18 }
 0xa47   : > { %v1868_v19 = vpop.f32.mrf.mxu0 }
 0xa48   : > { %v1940_v20 = vpack.c.bf16 %v1868_v19, %v1868_v19 }
 0xa4a   : > { %2705 = vmatmul.msk.bf16.vlgmr.msra.gmra.mxu0 %vm769_vm5, %v1940_v20 }
 0xa56   : > { %v1914_v21 = vpop.f32.mrf.mxu2 }
 0xa57   : > { %v1942_v22 = vpack.c.bf16 %v1914_v21, %v1914_v21  ;;  %v1937_v23 = vpop.f32.mrf.mxu3 }
 0xa58   : > { %v1943_v24 = vpack.c.bf16 %v1937_v23, %v1937_v23  ;;  %v1891_v25 = vpop.f32.mrf.mxu1  ;;  %v2815_v23 = vld [vmem:[%s3629_s7 + $0x28] sm:$0xff] }
 0xa59   : > { %v1941_v26 = vpack.c.bf16 %v1891_v25, %v1891_v25  ;;  %2707 = vmatmul.msk.bf16.vlgmr.msra.gmra.mxu2 %vm769_vm5, %v1942_v22  ;;  %2190 = vmatpush.bf16.msra.mxu1 %v2815_v23 }
 0xa5a   : > { %2708 = vmatmul.msk.bf16.vlgmr.msrb.gmra.mxu3 %vm769_vm5, %v1943_v24 }
 0xa5b   : > { %2706 = vmatmul.msk.bf16.vlgmr.msrb.gmra.mxu1 %vm769_vm5, %v1941_v26 }
 0xac7   : > { %v1964_v27 = vpop.f32.mrf.mxu0 }
 0xac8   : > { %v2025_v31 = vsel %vm331_vm0, %v1964_v27, 0.0  ;;  %v2814_v27 = vld [vmem:[%s3629_s7 + $0x20] sm:$0xff] }
 0xac9   : > { %2191 = vmatpush.bf16.msra.mxu1 %v2814_v27 }
 0xacf   : > { %v1966_v28 = vpop.f32.mrf.mxu0 }
 0xad8   : > { %v1983_v29 = vpop.f32.mrf.mxu1 }
 0xad9   : > { %v2026_v30 = vsel %vm331_vm0, %v1983_v29, 0.0 }
 0xada   : > { %v2027_v32 = vadd.f32 %v2026_v30, %v2025_v31 }
 0xadc   : > { %v2002_v33 = vpop.f32.mrf.mxu2 }
 0xadd   : > { %v2028_v34 = vsel %vm331_vm0, %v2002_v33, 0.0  ;;  %v2021_v35 = vpop.f32.mrf.mxu3 }
 0xade   : > { %v2029_v36 = vadd.f32 %v2028_v34, %v2027_v32  ;;  %v2030_v39 = vsel %vm331_vm0, %v2021_v35, 0.0 }
 0xae0   : > { %v2031_v40 = vadd.f32 %v2030_v39, %v2029_v36  ;;  %v1985_v41 = vpop.f32.mrf.mxu1 }
 0xae2   : > { %v2035_v42 = vadd.f32 %v2891_v37, %v2031_v40 }
 0xae4   : > { %v2004_v43 = vpop.f32.mrf.mxu2  ;;  %v2036_v45 = vadd.f32 %v2035_v42, %v3399_v38  ;;  %v2812_v38 = vld [vmem:[%s3628_s6 + $0x10] sm:$0xff] }
 0xae5   : > { %v2023_v46 = vpop.f32.mrf.mxu3  ;;  %2095 = vmatpush.bf16.msrb.mxu0 %v2812_v38 }
 0xae6   : > { %v2039_v47 = vsel %vm331_vm0, %v2036_v45, 0.0 }
 0xae7   : > { %2040 = vadd.xlane.f32.xlu1 %v2039_v47 }
 0xb5a   : > { %v2041_v48 = vpop.xlane.xlu1 %2040 }
 0xb5b   : > { %v2042_v49 = vmul.f32 %v2041_v48, %v3117_v8 }
 0xb5d   : > { %v2043_v50 = vsub.f32 %v2036_v45, %v2042_v49 }
 0xb5f   : > { %v2044_v51 = vmul.f32 %v2043_v50, %v2043_v50 }
 0xb61   : > { %v2045_v52 = vsel %vm331_vm0, %v2044_v51, 0.0 }
 0xb62   : > { %2046 = vadd.xlane.f32.xlu2 %v2045_v52 }
 0xbd5   : > { %v2047_v54 = vpop.xlane.xlu2 %2046 }
 0xbd6   : > { %v2048_v55 = vmul.f32 %v2047_v54, %v3117_v8 }
 0xbd8   : > { %v2049_v56 = vadd.f32 1e-12, %v2048_v55  ;;  %v2895_v55 = vld [vmem:[%s3624_s2 + $0xc] ss:$0 sm:$0xff] }
 0xbda   : > { %2940 = vrsqrt.f32 %v2049_v56  ;;  %vm2056_vm4 = vweird.f32 %v2049_v56 }
 0xbe0   : > { %v2941_v57 = vpop.eup %2940 }
 0xbe1   : > { %v2051_v58 = vmul.f32 %v2941_v57, %v2049_v56  ;;  %vm2057_vm3 = vweird.f32 %v2941_v57 }
 0xbe2   : > { %vm2058_vm5 = vmor %vm2056_vm4, %vm2057_vm3 }
 0xbe3   : > { %v2052_v44 = vmul.f32 %v2941_v57, %v2051_v58 }
 0xbe5   : > { %v2053_v59 = vmul.f32 0.5, %v2052_v44 }
 0xbe7   : > { %v2054_v60 = vsub.f32 1.5, %v2053_v59 }
 0xbe9   : > { %v2055_v61 = vmul.f32 %v2941_v57, %v2054_v60 }
 0xbeb   : > { %v2059_v63 = vsel %vm2058_vm5, %v2941_v57, %v2055_v61 }
 0xbec   : > { %v2060_v1 = vmul.f32 %v2059_v63, %v2043_v50 }
 0xbee   : > { %v2062_v2 = vmul.f32 %v2892_v62, %v2060_v1  ;;  %v2229_v1 = vld [vmem:[%s3630_s8 + $0x18] sm:$0xff] }
 0xbef   : > { %2246 = vmatpush.msrb.mxu2 %v2229_v1 }
 0xbf0   : > { %v3539_v3 = vadd.f32 %v2893_v0, %v2062_v2  ;;  %v2228_v2 = vld [vmem:[%s3630_s8 + $0x10] sm:$0xff] }
 0xbf1   : > { %2247 = vmatpush.msrb.mxu2 %v2228_v2 }
 0xbf2   : > { %v2065_v4 = vpack.c.bf16 %v3539_v3, %v3539_v3 }
 0xbf4   : > { %2725 = vmatmul.msk.bf16.vlgmr.msrb.gmra.mxu0 %vm331_vm0, %v2065_v4  ;;  %v2226_v4 = vld [vmem:[%s3630_s8] sm:$0xff] }
 0xc71   : > { %v2097_v6 = vpop.f32.mrf.mxu0 }
 0xc72   : > { %v2098_v7 = vadd.f32 %v2894_v5, %v2097_v6 }
 0xc74   : > { %v2102_v9 = vmul.f32 0.70710677, %v2098_v7  ;;  %v2101_v52 = vmul.f32 0.5, %v2098_v7 }
 0xc76   : > { %v2103_v10 = vmul.f32 %v2102_v9, %v2102_v9 }
 0xc78   : > { %v2104_v11 = vmin.f32 %v2103_v10, 16.0 }
 0xc79   : > { %v2099_v12 = vpop.f32.mrf.mxu0 }
 0xc7a   : > { %v2105_v14 = vmul.f32 2.1237322e-06, %v2104_v11  ;;  %v2116_v15 = vmul.f32 3.8918573e-05, %v2104_v11 }
 0xc7c   : > { %v2106_v16 = vadd.f32 0.00028619796, %v2105_v14  ;;  %v2117_v17 = vadd.f32 0.001143296, %v2116_v15  ;;  %v2896_v15 = vld [vmem:[%s3624_s2 + $0xd] ss:$0 sm:$0xff] }
 0xc7e   : > { %v2107_v19 = vmul.f32 %v2106_v16, %v2104_v11  ;;  %v2118_v20 = vmul.f32 %v2117_v17, %v2104_v11 }
 0xc80   : > { %v2119_v21 = vadd.f32 0.014752088, %v2118_v20  ;;  %v2108_v22 = vadd.f32 0.0036580483, %v2107_v19  ;;  %v2230_v20 = vld [vmem:[%s3623_s1 + $0x2] sm:$0x1] }
 0xc82   : > { %v2120_v24 = vmul.f32 %v2119_v21, %v2104_v11  ;;  %v2109_v26 = vmul.f32 %v2108_v22, %v2104_v11 }
 0xc84   : > { %v2121_v25 = vadd.f32 0.112945676, %v2120_v24  ;;  %v2110_v30 = vadd.f32 0.05243302, %v2109_v26 }
 0xc86   : > { %v2122_v28 = vmul.f32 %v2121_v25, %v2104_v11  ;;  %v2111_v33 = vmul.f32 %v2110_v30, %v2104_v11 }
 0xc88   : > { %v2123_v29 = vadd.f32 0.4994258, %v2122_v28  ;;  %v2112_v34 = vadd.f32 0.18741608, %v2111_v33 }
 0xc8a   : > { %v2124_v31 = vmul.f32 %v2123_v29, %v2104_v11  ;;  %v2113_v36 = vmul.f32 %v2112_v34, %v2104_v11 }
 0xc8c   : > { %v2125_v32 = vadd.f32 1.0, %v2124_v31  ;;  %v2114_v41 = vadd.f32 1.1283791, %v2113_v36 }
 0xc8e   : > { %2942 = vrcp.f32 %v2125_v32  ;;  %v2137_v40 = vand.u32 2147483648, %v2125_v32  ;;  %v2135_v43 = vand.u32 2147483647, %v2125_v32  ;;  %vm2131_vm7 = vweird.f32 %v2125_v32 }
 0xc8f   : > { %v2115_v47 = vmul.f32 %v2114_v41, %v2102_v9 }
 0xc90   : > { %v2138_v46 = vor.u32 1.1754944e-38, %v2137_v40  ;;  %vm2136_vm9 = vcmp.eq.f32.partialorder %v2135_v43, 8.507059e+37 }
 0xc94   : > { %v2943_v35 = vpop.eup %2942 }
 0xc95   : > { %v2127_v37 = vmul.f32 %v2943_v35, %v2125_v32  ;;  %vm2132_vm6 = vweird.f32 %v2943_v35 }
 0xc96   : > { %vm2133_vm8 = vmor %vm2131_vm7, %vm2132_vm6 }
 0xc97   : > { %v2128_v39 = vsub.f32 1.0, %v2127_v37 }
 0xc99   : > { %v2129_v42 = vmul.f32 %v2943_v35, %v2128_v39 }
 0xc9b   : > { %v2130_v45 = vadd.f32 %v2943_v35, %v2129_v42 }
 0xc9d   : > { %v2134_v48 = vsel %vm2133_vm8, %v2943_v35, %v2130_v45 }
 0xc9e   : > { %v2139_v49 = vsel %vm2136_vm9, %v2138_v46, %v2134_v48 }
 0xc9f   : > { %v2140_v50 = vmul.f32 %v2139_v49, %v2115_v47 }
 0xca1   : > { %v2726_v51 = vclamps-f32 %v2140_v50, 1.0 }
 0xca3   : > { %v2143_v53 = vadd.f32 1.0, %v2726_v51 }
 0xca5   : > { %v2144_v38 = vmul.f32 %v2143_v53, %v2101_v52 }
 0xca7   : > { %v2145_v54 = vpack.c.bf16 %v2144_v38, %v2144_v38 }
 0xca9   : > { %2752 = vmatmul.msk.bf16.vlgmr.msra.gmra.mxu1 %vm1248_vm14, %v2145_v54 }
 0xd26   : > { %v2193_v56 = vpop.f32.mrf.mxu1 }
 0xd27   : > { %v2194_v57 = vadd.f32 %v2895_v55, %v2193_v56 }
 0xd29   : > { %v2197_v58 = vadd.f32 %v2194_v57, %v3539_v3  ;;  %v2227_v3 = vld [vmem:[%s3630_s8 + $0x8] sm:$0xff] }
 0xd2a   : > { %2248 = vmatpush.msrb.mxu2 %v2227_v3 }
 0xd2b   : > { %v2200_v44 = vsel %vm331_vm0, %v2197_v58, 0.0 }
 0xd2c   : > { %2201 = vadd.xlane.f32.xlu0 %v2200_v44  ;;  %2249 = vmatpush.msrb.mxu2 %v2226_v4 }
 0xd2e   : > { %v2195_v59 = vpop.f32.mrf.mxu1 }
 0xd9f   : > { %v2202_v60 = vpop.xlane.xlu0 %2201 }
 0xda0   : > { %v2203_v61 = vmul.f32 %v2202_v60, %v3117_v8 }
 0xda2   : > { %v2204_v62 = vsub.f32 %v2197_v58, %v2203_v61 }
 0xda4   : > { %v2205_v63 = vmul.f32 %v2204_v62, %v2204_v62 }
 0xda6   : > { %v2206_v0 = vsel %vm331_vm0, %v2205_v63, 0.0 }
 0xda7   : > { %2207 = vadd.xlane.f32.xlu1 %v2206_v0 }
 0xe1a   : > { %v2208_v5 = vpop.xlane.xlu1 %2207 }
 0xe1b   : > { %v2209_v6 = vmul.f32 %v2208_v5, %v3117_v8  ;;  %v2897_v8 = vld [vmem:[%s3624_s2 + $0xe] ss:$0 sm:$0xff] }
 0xe1d   : > { %v2210_v7 = vadd.f32 1e-12, %v2209_v6 }
 0xe1f   : > { %2944 = vrsqrt.f32 %v2210_v7  ;;  %vm2217_vm11 = vweird.f32 %v2210_v7 }
 0xe25   : > { %v2945_v9 = vpop.eup %2944 }
 0xe26   : > { %v2212_v10 = vmul.f32 %v2945_v9, %v2210_v7  ;;  %vm2218_vm10 = vweird.f32 %v2945_v9 }
 0xe27   : > { %vm2219_vm12 = vmor %vm2217_vm11, %vm2218_vm10 }
 0xe28   : > { %v2213_v11 = vmul.f32 %v2945_v9, %v2212_v10 }
 0xe2a   : > { %v2214_v12 = vmul.f32 0.5, %v2213_v11 }
 0xe2c   : > { %v2215_v13 = vsub.f32 1.5, %v2214_v12 }
 0xe2e   : > { %v2216_v14 = vmul.f32 %v2945_v9, %v2215_v13 }
 0xe30   : > { %v2220_v16 = vsel %vm2219_vm12, %v2945_v9, %v2216_v14 }
 0xe31   : > { %v2221_v17 = vmul.f32 %v2220_v16, %v2204_v62 }
 0xe33   : > { %v2223_v18 = vmul.f32 %v2896_v15, %v2221_v17 }
 0xe35   : > { %v2225_v19 = vadd.f32 %v2897_v8, %v2223_v18 }
 0xe37   : > { %2755 = vmatmul.msk.f32.vlgmr.msrb.gmra.mxu2 %vm331_vm0, %v2225_v19 }
 0xeba   : > { %v2251_v21 = vpop.f32.mrf.mxu2 }
 0xebb   : > { %v2252_v22 = vadd.f32 %v2251_v21, %v2230_v20 }
 0xebd   : > { %2946 = vtanh.f32 %v2252_v22 }
 0xec3   : > { %v2947_v23 = vpop.eup %2946 }
 0xec4   : > { %2256 = vst.msk [vmem:[%s322_s28] sm:$0x1] %vm2255_vm13, %v2947_v23 }
 0xec5   : > { %2975 = shalt.err (!%p2972_p3)
}
 0xec6   : > { %2818 = dma.vmem_to_hbm [thread:$0]  (%p3101_p5), %s2269_s29, 16, %s2271_s14, %s2258_s16  }
 0xec7 PF: > { %p2824_p4 = scmp.ge.s32.totalorder %s3010_s12, 2  ;;  %s2282_s24 = sand.u32 1, %s2998_s30  }
 0xec8   : > { %s2283_s27 = scalar_lea.sflag [#allocation3], %s2282_s24 }
 0xec9   : > { %p2821_p7 = pnand %p2824_p4, %p3105_p6 }
 0xecb   : > { %p2822_p8 = pneg %p2821_p7 }
 0xecd   : > { %2993 = dma.done.wait (%p2822_p8), %s2283_s27, 16  }
 0xece   : > { %2995 = vsyncadd (%p2822_p8), %s2283_s27, 4294967280  ;;  %p19_p9 = scmp.ge.s32.totalorder %s3088_s15, 4   ;;  %s3634_s30 = smov %s3002_s10 }
 0xecf   : > { %s3635_s10 = smov %s3006_s11  ;;  %s3636_s11 = smov %s3099_s18 }
 0xed0   : > { %s3637_s12 = smov %s3088_s15  ;;  %21 = sbr.rel (!%p19_p9) target bundleno = 3 (0x3), region = 105 }
 0xed5   :  { %2288 = vsyncpa [#allocation3], 1 }
 0xed6   :  { %2290 = vsyncpa [#allocation3 + $0x1], 1 }

</bundles_post_ra>
